<compile_context>
chip_gen: v7x
topology: tpu7x:2x2x1
jax: 0.10.0
libtpu: 0.0.40
codegen_flags: <defaults>
</compile_context>

<pallas_src>
from functools import partial

import jax
import jax.numpy as jnp
from jax.experimental import pallas as pl
from jax.experimental.pallas import tpu as pltpu

NEG_SLOPE = 0.01        # F.leaky_relu default negative_slope
BN_EPS = 1e-5
NPG = 8                 # reduced_sensors=True -> 8 EEG sensors per graph
TILE_GRAPHS = 16        # graphs per grid step -> 128 node rows per MXU matmul
PAD = 128               # lane-padded feature width used for every layer

# layer dims: conv1..conv4 then fc1..fc3
GCN_DIMS = [(6, 16), (16, 32), (32, 64), (64, 50)]
FC_DIMS = [(50, 30), (30, 20), (20, 2)]
LAYER_DIMS = GCN_DIMS + FC_DIMS
NUM_LAYERS = len(LAYER_DIMS)    # 7


def _round_up(n, m):
    return -(-n // m) * m


def _leaky(x):
    return jnp.where(x >= 0, x, NEG_SLOPE * x)


def eeg_gcn_kernel(x_ref, a_ref, w_ref, b_ref, o_ref):
    """One grid step: TILE_GRAPHS graphs (TILE_GRAPHS*NPG = 128 node rows)."""
    tb = o_ref.shape[0]                 # graphs in this tile (16)
    npg = x_ref.shape[0] // tb          # nodes per graph (8)

    a = a_ref[...]                      # [128, 128] block-diag adjacency (tgt, src)
    h = x_ref[...]                      # [128, 128] node features (cols 0:6 real)

    def matw(v, idx):
        # full-tile weight block; zero-padded rows/cols keep padding lanes at 0
        w = w_ref[idx * PAD:(idx + 1) * PAD, :]                  # [128, 128]
        return jnp.dot(v, w, preferred_element_type=jnp.float32)

    def bias(idx):
        return b_ref[idx:idx + 1, :]                             # [1, 128]

    # conv1..conv4 (+ folded BN on conv4) each followed by leaky_relu:
    #   h <- leaky( A @ (h @ W_i) + b_i )
    for i in range(4):
        h = _leaky(jnp.dot(a, matw(h, i), preferred_element_type=jnp.float32)
                   + bias(i))

    # global_add_pool: sum over the per-graph node axis (tile-aligned [16,8,128])
    g = h.reshape(tb, npg, PAD).sum(axis=1)                      # [16, 128]

    g = _leaky(matw(g, 4) + bias(4))     # fc_block1 + leaky_relu
    # TODO(synk): dropout(p=0.2) is identity in eval mode; not applied here.
    g = _leaky(matw(g, 5) + bias(5))     # fc_block2 + leaky_relu
    g = matw(g, 6) + bias(6)             # fc_block3 -> logits in cols 0:2, rest zero

    o_ref[...] = g.astype(o_ref.dtype)


def init_params(key):
    """Deterministic parameter construction (shapes follow the module __init__)."""
    params = []
    keys = jax.random.split(key, 2 * (len(GCN_DIMS) + len(FC_DIMS)))
    ki = 0
    for (fi, fo) in GCN_DIMS:
        w = jax.random.normal(keys[ki], (fi, fo), jnp.float32) * (2.0 / (fi + fo)) ** 0.5
        b = jax.random.normal(keys[ki + 1], (1, fo), jnp.float32) * 0.01
        params += [w, b]
        ki += 2
    # BatchNorm(50): gamma=1, beta=0, running_mean=0, running_var=1 (defaults)
    params += [jnp.ones((1, 50), jnp.float32), jnp.zeros((1, 50), jnp.float32),
               jnp.zeros((1, 50), jnp.float32), jnp.ones((1, 50), jnp.float32)]
    for (fi, fo) in FC_DIMS:
        # xavier_normal_ gain=1 (stored as [in, out]; PyTorch weight is [out, in])
        w = jax.random.normal(keys[ki], (fi, fo), jnp.float32) * (2.0 / (fi + fo)) ** 0.5
        b = jax.random.normal(keys[ki + 1], (1, fo), jnp.float32) * 0.01
        params += [w, b]
        ki += 2
    return params


def pack_params(params):
    """Fold eval-mode BN into conv4 and pack everything into two lane-dense slabs."""
    (w1, b1, w2, b2, w3, b3, w4, b4,
     bn_g, bn_b, bn_m, bn_v,
     fw1, fb1, fw2, fb2, fw3, fb3) = params
    scale = bn_g / jnp.sqrt(bn_v + BN_EPS)          # [1, 50]
    w4f = w4 * scale                                # BN folded into conv4 weight
    b4f = (b4 - bn_m) * scale + bn_b                # ... and bias
    ws = [w1, w2, w3, w4f, fw1, fw2, fw3]
    bs = [b1, b2, b3, b4f, fb1, fb2, fb3]

    w_slab = jnp.zeros((NUM_LAYERS * PAD, PAD), jnp.float32)
    b_slab = jnp.zeros((8, PAD), jnp.float32)
    for i, (w, b) in enumerate(zip(ws, bs)):
        fi, fo = LAYER_DIMS[i]
        w_slab = w_slab.at[i * PAD:i * PAD + fi, :fo].set(w)
        b_slab = b_slab.at[i, :fo].set(b[0])
    return w_slab, b_slab


def build_graph_tensors(x, edge_index, edge_weight, batch, num_graphs,
                        nodes_per_graph=NPG, tile_graphs=TILE_GRAPHS):
    """Densify edges into per-graph adjacencies and build lane-padded kernel inputs.

    Hoisted out of the per-call path: for a fixed sensor montage this runs once.
    Assumes PyG-style contiguous batching with equal-size graphs (8 sensors each).
    Returns (x_flat [G_pad*8, 128], A_bd [tiles*128, 128], A [G, 8, 8]).
    """
    src, tgt = edge_index[0], edge_index[1]
    g_t = batch[tgt]
    g_s = batch[src]
    A = jnp.zeros((num_graphs, nodes_per_graph, nodes_per_graph), jnp.float32)
    A = A.at[g_t, tgt - g_t * nodes_per_graph, src - g_s * nodes_per_graph].add(
        edge_weight.astype(jnp.float32))

    g_pad = _round_up(num_graphs, tile_graphs)
    f_in = x.shape[-1]

    # lane-padded node features
    x_g = jnp.zeros((g_pad, nodes_per_graph, PAD), jnp.float32)
    x_g = x_g.at[:num_graphs, :, :f_in].set(
        x.astype(jnp.float32).reshape(num_graphs, nodes_per_graph, f_in))
    x_flat = x_g.reshape(g_pad * nodes_per_graph, PAD)

    # per-tile block-diagonal adjacency, stacked along rows: [tiles*128, 128]
    A_pad = jnp.zeros((g_pad, nodes_per_graph, nodes_per_graph), jnp.float32)
    A_pad = A_pad.at[:num_graphs].set(A)
    num_tiles = g_pad // tile_graphs
    A_t = A_pad.reshape(num_tiles, tile_graphs, nodes_per_graph, nodes_per_graph)
    eye = jnp.eye(tile_graphs, dtype=jnp.float32)
    A_bd = jnp.einsum('tgrc,gh->tgrhc', A_t, eye).reshape(
        num_tiles * tile_graphs * nodes_per_graph, tile_graphs * nodes_per_graph)
    return x_flat, A_bd, A


@partial(jax.jit, static_argnames=("num_graphs", "tile_graphs", "nodes_per_graph"))
def eeg_graph_conv_net(x_flat, a_bd, w_slab, b_slab, *, num_graphs,
                       tile_graphs=TILE_GRAPHS, nodes_per_graph=NPG):
    rows = tile_graphs * nodes_per_graph            # 128
    g_pad = x_flat.shape[0] // nodes_per_graph
    grid = (g_pad // tile_graphs,)

    out = pl.pallas_call(
        eeg_gcn_kernel,
        out_shape=jax.ShapeDtypeStruct((g_pad, PAD), jnp.float32),
        grid=grid,
        in_specs=[
            # per-tile inputs advance with the grid (double-buffered by Pallas)
            pl.BlockSpec((rows, PAD), lambda i: (i, 0)),          # node features
            pl.BlockSpec((rows, rows), lambda i: (i, 0)),         # block-diag adjacency
            # packed weight/bias slabs: constant index_map -> DMA'd once, stay resident
            pl.BlockSpec((NUM_LAYERS * PAD, PAD), lambda i: (0, 0)),
            pl.BlockSpec((8, PAD), lambda i: (0, 0)),
        ],
        out_specs=pl.BlockSpec((tile_graphs, PAD), lambda i: (i, 0)),
        compiler_params=pltpu.CompilerParams(dimension_semantics=("parallel",)),
    )(x_flat, a_bd, w_slab, b_slab)

    return out[:num_graphs, :2]


def reference_forward(x, A, params, num_graphs):
    """Pure-JAX reference matching the PyTorch forward (eval mode)."""
    (w1, b1, w2, b2, w3, b3, w4, b4,
     bn_g, bn_b, bn_m, bn_v,
     fw1, fb1, fw2, fb2, fw3, fb3) = params
    xg = x.astype(jnp.float32).reshape(num_graphs, NPG, -1)

    def gcn(h, w, b):
        return jnp.einsum('gij,gjf->gif', A, h @ w) + b

    h = _leaky(gcn(xg, w1, b1))
    h = _leaky(gcn(h, w2, b2))
    h = _leaky(gcn(h, w3, b3))
    h = gcn(h, w4, b4)
    h = (h - bn_m) / jnp.sqrt(bn_v + BN_EPS) * bn_g + bn_b
    h = _leaky(h)
    g = h.sum(axis=1)                       # global_add_pool
    g = _leaky(g @ fw1 + fb1)
    g = _leaky(g @ fw2 + fb2)               # dropout identity in eval mode
    return g @ fw3 + fb3


if __name__ == "__main__":
    key = jax.random.PRNGKey(0)
    k_x, k_w, k_p = jax.random.split(key, 3)

    num_graphs = 32            # module default batch_size=32 -> grid of 2 steps
    N = num_graphs * NPG
    F_IN = 6

    # Node features
    x = jax.random.normal(k_x, (N, F_IN), jnp.float32)

    # Fully-connected (with self-loops) edges within each graph
    local = jnp.arange(NPG, dtype=jnp.int32)
    ii, jj = jnp.meshgrid(local, local, indexing="ij")
    base = (jnp.arange(num_graphs, dtype=jnp.int32) * NPG)[:, None]
    src = (base + ii.reshape(-1)[None, :]).reshape(-1)
    tgt = (base + jj.reshape(-1)[None, :]).reshape(-1)
    edge_index = jnp.stack([src, tgt]).astype(jnp.int32)          # [2, E]
    edge_weight = jax.random.uniform(k_w, (edge_index.shape[1],), jnp.float32)
    batch = jnp.repeat(jnp.arange(num_graphs, dtype=jnp.int32), NPG)

    # One-time setup (fixed montage / fixed weights): pack + densify outside hot path
    params = init_params(k_p)
    w_slab, b_slab = pack_params(params)
    x_flat, A_bd, A = build_graph_tensors(x, edge_index, edge_weight, batch, num_graphs)

    out = eeg_graph_conv_net(x_flat, A_bd, w_slab, b_slab, num_graphs=num_graphs)
    out = jax.block_until_ready(out)
    assert out.shape == (num_graphs, 2) and out.dtype == jnp.float32

    # correctness check against a pure-JAX reference of the module forward
    ref = reference_forward(x, A, params, num_graphs)
    assert jnp.allclose(out, ref, atol=2e-3, rtol=2e-3), \
        float(jnp.max(jnp.abs(out - ref)))
    print("KERNEL_OK")
</pallas_src>

<mosaic_0001>
module attributes {stable_mosaic.version = 11 : i64} {
  func.func @eeg_gcn_kernel(%arg0: i32, %arg1: memref<128x128xf32, #tpu.memory_space<vmem>>, %arg2: memref<128x128xf32, #tpu.memory_space<vmem>>, %arg3: memref<896x128xf32, #tpu.memory_space<vmem>>, %arg4: memref<8x128xf32, #tpu.memory_space<vmem>>, %arg5: memref<16x128xf32, #tpu.memory_space<vmem>>) attributes {dimension_semantics = [#tpu.dimension_semantics<parallel>], iteration_bounds = array<i64: 2>, scalar_prefetch = 0 : i64, scratch_operands = 0 : i64, tpu.core_type = #tpu.core_type<tc>, window_params = [{transform_indices = @transform_0, window_bounds = array<i64: 128, 128>}, {transform_indices = @transform_1, window_bounds = array<i64: 128, 128>}, {pipeline_mode = #tpu.pipeline_mode<synchronous>, transform_indices = @transform_2, window_bounds = array<i64: 896, 128>}, {pipeline_mode = #tpu.pipeline_mode<synchronous>, transform_indices = @transform_3, window_bounds = array<i64: 8, 128>}, {transform_indices = @transform_4, window_bounds = array<i64: 16, 128>}]} {
    %c0 = arith.constant 0 : index
    %c0_0 = arith.constant 0 : index
    %0 = vector.load %arg2[%c0, %c0_0] : memref<128x128xf32, #tpu.memory_space<vmem>>, vector<128x128xf32>
    %c0_1 = arith.constant 0 : index
    %c0_2 = arith.constant 0 : index
    %1 = vector.load %arg1[%c0_1, %c0_2] : memref<128x128xf32, #tpu.memory_space<vmem>>, vector<128x128xf32>
    %c0_3 = arith.constant 0 : index
    %c0_4 = arith.constant 0 : index
    %2 = vector.load %arg3[%c0_3, %c0_4] : memref<896x128xf32, #tpu.memory_space<vmem>>, vector<128x128xf32>
    %cst = arith.constant dense<0.000000e+00> : vector<128x128xf32>
    %3 = tpu.matmul %1, %2, %cst {dimension_numbers = #tpu.dot_dimension_numbers<[1], [0], [0], [1], [0, 0, 1, 1], [], []>} : vector<128x128xf32>, vector<128x128xf32>, vector<128x128xf32> -> vector<128x128xf32>
    %cst_5 = arith.constant dense<0.000000e+00> : vector<128x128xf32>
    %4 = tpu.matmul %0, %3, %cst_5 {dimension_numbers = #tpu.dot_dimension_numbers<[1], [0], [0], [1], [0, 0, 1, 1], [], []>} : vector<128x128xf32>, vector<128x128xf32>, vector<128x128xf32> -> vector<128x128xf32>
    %c0_6 = arith.constant 0 : index
    %c0_7 = arith.constant 0 : index
    %5 = vector.load %arg4[%c0_6, %c0_7] : memref<8x128xf32, #tpu.memory_space<vmem>>, vector<1x128xf32>
    %6 = vector.broadcast %5 : vector<1x128xf32> to vector<128x128xf32>
    %7 = arith.addf %4, %6 : vector<128x128xf32>
    %cst_8 = arith.constant 0.000000e+00 : f32
    %8 = vector.broadcast %cst_8 : f32 to vector<128x128xf32>
    %9 = arith.cmpf oge, %7, %8 : vector<128x128xf32>
    %cst_9 = arith.constant 0.00999999977 : f32
    %10 = vector.broadcast %cst_9 : f32 to vector<128x128xf32>
    %11 = arith.mulf %10, %7 : vector<128x128xf32>
    %12 = arith.select %9, %7, %11 : vector<128x128xi1>, vector<128x128xf32>
    %c128 = arith.constant 128 : index
    %c0_10 = arith.constant 0 : index
    %13 = vector.load %arg3[%c128, %c0_10] : memref<896x128xf32, #tpu.memory_space<vmem>>, vector<128x128xf32>
    %cst_11 = arith.constant dense<0.000000e+00> : vector<128x128xf32>
    %14 = tpu.matmul %12, %13, %cst_11 {dimension_numbers = #tpu.dot_dimension_numbers<[1], [0], [0], [1], [0, 0, 1, 1], [], []>} : vector<128x128xf32>, vector<128x128xf32>, vector<128x128xf32> -> vector<128x128xf32>
    %cst_12 = arith.constant dense<0.000000e+00> : vector<128x128xf32>
    %15 = tpu.matmul %0, %14, %cst_12 {dimension_numbers = #tpu.dot_dimension_numbers<[1], [0], [0], [1], [0, 0, 1, 1], [], []>} : vector<128x128xf32>, vector<128x128xf32>, vector<128x128xf32> -> vector<128x128xf32>
    %c1 = arith.constant 1 : index
    %c0_13 = arith.constant 0 : index
    %16 = vector.load %arg4[%c1, %c0_13] : memref<8x128xf32, #tpu.memory_space<vmem>>, vector<1x128xf32>
    %17 = vector.broadcast %16 : vector<1x128xf32> to vector<128x128xf32>
    %18 = arith.addf %15, %17 : vector<128x128xf32>
    %cst_14 = arith.constant 0.000000e+00 : f32
    %19 = vector.broadcast %cst_14 : f32 to vector<128x128xf32>
    %20 = arith.cmpf oge, %18, %19 : vector<128x128xf32>
    %cst_15 = arith.constant 0.00999999977 : f32
    %21 = vector.broadcast %cst_15 : f32 to vector<128x128xf32>
    %22 = arith.mulf %21, %18 : vector<128x128xf32>
    %23 = arith.select %20, %18, %22 : vector<128x128xi1>, vector<128x128xf32>
    %c256 = arith.constant 256 : index
    %c0_16 = arith.constant 0 : index
    %24 = vector.load %arg3[%c256, %c0_16] : memref<896x128xf32, #tpu.memory_space<vmem>>, vector<128x128xf32>
    %cst_17 = arith.constant dense<0.000000e+00> : vector<128x128xf32>
    %25 = tpu.matmul %23, %24, %cst_17 {dimension_numbers = #tpu.dot_dimension_numbers<[1], [0], [0], [1], [0, 0, 1, 1], [], []>} : vector<128x128xf32>, vector<128x128xf32>, vector<128x128xf32> -> vector<128x128xf32>
    %cst_18 = arith.constant dense<0.000000e+00> : vector<128x128xf32>
    %26 = tpu.matmul %0, %25, %cst_18 {dimension_numbers = #tpu.dot_dimension_numbers<[1], [0], [0], [1], [0, 0, 1, 1], [], []>} : vector<128x128xf32>, vector<128x128xf32>, vector<128x128xf32> -> vector<128x128xf32>
    %c2 = arith.constant 2 : index
    %c0_19 = arith.constant 0 : index
    %27 = vector.load %arg4[%c2, %c0_19] : memref<8x128xf32, #tpu.memory_space<vmem>>, vector<1x128xf32>
    %28 = vector.broadcast %27 : vector<1x128xf32> to vector<128x128xf32>
    %29 = arith.addf %26, %28 : vector<128x128xf32>
    %cst_20 = arith.constant 0.000000e+00 : f32
    %30 = vector.broadcast %cst_20 : f32 to vector<128x128xf32>
    %31 = arith.cmpf oge, %29, %30 : vector<128x128xf32>
    %cst_21 = arith.constant 0.00999999977 : f32
    %32 = vector.broadcast %cst_21 : f32 to vector<128x128xf32>
    %33 = arith.mulf %32, %29 : vector<128x128xf32>
    %34 = arith.select %31, %29, %33 : vector<128x128xi1>, vector<128x128xf32>
    %c384 = arith.constant 384 : index
    %c0_22 = arith.constant 0 : index
    %35 = vector.load %arg3[%c384, %c0_22] : memref<896x128xf32, #tpu.memory_space<vmem>>, vector<128x128xf32>
    %cst_23 = arith.constant dense<0.000000e+00> : vector<128x128xf32>
    %36 = tpu.matmul %34, %35, %cst_23 {dimension_numbers = #tpu.dot_dimension_numbers<[1], [0], [0], [1], [0, 0, 1, 1], [], []>} : vector<128x128xf32>, vector<128x128xf32>, vector<128x128xf32> -> vector<128x128xf32>
    %cst_24 = arith.constant dense<0.000000e+00> : vector<128x128xf32>
    %37 = tpu.matmul %0, %36, %cst_24 {dimension_numbers = #tpu.dot_dimension_numbers<[1], [0], [0], [1], [0, 0, 1, 1], [], []>} : vector<128x128xf32>, vector<128x128xf32>, vector<128x128xf32> -> vector<128x128xf32>
    %c3 = arith.constant 3 : index
    %c0_25 = arith.constant 0 : index
    %38 = vector.load %arg4[%c3, %c0_25] : memref<8x128xf32, #tpu.memory_space<vmem>>, vector<1x128xf32>
    %39 = vector.broadcast %38 : vector<1x128xf32> to vector<128x128xf32>
    %40 = arith.addf %37, %39 : vector<128x128xf32>
    %cst_26 = arith.constant 0.000000e+00 : f32
    %41 = vector.broadcast %cst_26 : f32 to vector<128x128xf32>
    %42 = arith.cmpf oge, %40, %41 : vector<128x128xf32>
    %cst_27 = arith.constant 0.00999999977 : f32
    %43 = vector.broadcast %cst_27 : f32 to vector<128x128xf32>
    %44 = arith.mulf %43, %40 : vector<128x128xf32>
    %45 = arith.select %42, %40, %44 : vector<128x128xi1>, vector<128x128xf32>
    %46 = vector.shape_cast %45 : vector<128x128xf32> to vector<16x8x128xf32>
    %cst_28 = arith.constant dense<0.000000e+00> : vector<16x128xf32>
    %47 = vector.multi_reduction <add>, %46, %cst_28 [1] : vector<16x8x128xf32> to vector<16x128xf32>
    %c512 = arith.constant 512 : index
    %c0_29 = arith.constant 0 : index
    %48 = vector.load %arg3[%c512, %c0_29] : memref<896x128xf32, #tpu.memory_space<vmem>>, vector<128x128xf32>
    %cst_30 = arith.constant dense<0.000000e+00> : vector<16x128xf32>
    %49 = tpu.matmul %47, %48, %cst_30 {dimension_numbers = #tpu.dot_dimension_numbers<[1], [0], [0], [1], [0, 0, 1, 1], [], []>} : vector<16x128xf32>, vector<128x128xf32>, vector<16x128xf32> -> vector<16x128xf32>
    %c4 = arith.constant 4 : index
    %c0_31 = arith.constant 0 : index
    %50 = vector.load %arg4[%c4, %c0_31] : memref<8x128xf32, #tpu.memory_space<vmem>>, vector<1x128xf32>
    %51 = vector.broadcast %50 : vector<1x128xf32> to vector<16x128xf32>
    %52 = arith.addf %49, %51 : vector<16x128xf32>
    %cst_32 = arith.constant 0.000000e+00 : f32
    %53 = vector.broadcast %cst_32 : f32 to vector<16x128xf32>
    %54 = arith.cmpf oge, %52, %53 : vector<16x128xf32>
    %cst_33 = arith.constant 0.00999999977 : f32
    %55 = vector.broadcast %cst_33 : f32 to vector<16x128xf32>
    %56 = arith.mulf %55, %52 : vector<16x128xf32>
    %57 = arith.select %54, %52, %56 : vector<16x128xi1>, vector<16x128xf32>
    %c640 = arith.constant 640 : index
    %c0_34 = arith.constant 0 : index
    %58 = vector.load %arg3[%c640, %c0_34] : memref<896x128xf32, #tpu.memory_space<vmem>>, vector<128x128xf32>
    %cst_35 = arith.constant dense<0.000000e+00> : vector<16x128xf32>
    %59 = tpu.matmul %57, %58, %cst_35 {dimension_numbers = #tpu.dot_dimension_numbers<[1], [0], [0], [1], [0, 0, 1, 1], [], []>} : vector<16x128xf32>, vector<128x128xf32>, vector<16x128xf32> -> vector<16x128xf32>
    %c5 = arith.constant 5 : index
    %c0_36 = arith.constant 0 : index
    %60 = vector.load %arg4[%c5, %c0_36] : memref<8x128xf32, #tpu.memory_space<vmem>>, vector<1x128xf32>
    %61 = vector.broadcast %60 : vector<1x128xf32> to vector<16x128xf32>
    %62 = arith.addf %59, %61 : vector<16x128xf32>
    %cst_37 = arith.constant 0.000000e+00 : f32
    %63 = vector.broadcast %cst_37 : f32 to vector<16x128xf32>
    %64 = arith.cmpf oge, %62, %63 : vector<16x128xf32>
    %cst_38 = arith.constant 0.00999999977 : f32
    %65 = vector.broadcast %cst_38 : f32 to vector<16x128xf32>
    %66 = arith.mulf %65, %62 : vector<16x128xf32>
    %67 = arith.select %64, %62, %66 : vector<16x128xi1>, vector<16x128xf32>
    %c768 = arith.constant 768 : index
    %c0_39 = arith.constant 0 : index
    %68 = vector.load %arg3[%c768, %c0_39] : memref<896x128xf32, #tpu.memory_space<vmem>>, vector<128x128xf32>
    %cst_40 = arith.constant dense<0.000000e+00> : vector<16x128xf32>
    %69 = tpu.matmul %67, %68, %cst_40 {dimension_numbers = #tpu.dot_dimension_numbers<[1], [0], [0], [1], [0, 0, 1, 1], [], []>} : vector<16x128xf32>, vector<128x128xf32>, vector<16x128xf32> -> vector<16x128xf32>
    %c6 = arith.constant 6 : index
    %c0_41 = arith.constant 0 : index
    %70 = vector.load %arg4[%c6, %c0_41] : memref<8x128xf32, #tpu.memory_space<vmem>>, vector<1x128xf32>
    %71 = vector.broadcast %70 : vector<1x128xf32> to vector<16x128xf32>
    %72 = arith.addf %69, %71 : vector<16x128xf32>
    %c0_42 = arith.constant 0 : index
    %c0_43 = arith.constant 0 : index
    %73 = vector.load %arg5[%c0_42, %c0_43] : memref<16x128xf32, #tpu.memory_space<vmem>>, vector<16x128xf32>
    tpu.vector_store %arg5[%c0_42, %c0_43], %72 {strides = array<i32>} : memref<16x128xf32, #tpu.memory_space<vmem>>, vector<16x128xf32>,
    return
  }
  func.func @transform_0(%arg0: i32) -> (i32, i32) {
    %c0_i32 = arith.constant 0 : i32
    %c0_i32_0 = arith.constant 0 : i32
    return %arg0, %c0_i32 : i32, i32
  }
  func.func @transform_1(%arg0: i32) -> (i32, i32) {
    %c0_i32 = arith.constant 0 : i32
    %c0_i32_0 = arith.constant 0 : i32
    return %arg0, %c0_i32 : i32, i32
  }
  func.func @transform_2(%arg0: i32) -> (i32, i32) {
    %c0_i32 = arith.constant 0 : i32
    %c0_i32_0 = arith.constant 0 : i32
    %c0_i32_1 = arith.constant 0 : i32
    return %c0_i32, %c0_i32_0 : i32, i32
  }
  func.func @transform_3(%arg0: i32) -> (i32, i32) {
    %c0_i32 = arith.constant 0 : i32
    %c0_i32_0 = arith.constant 0 : i32
    %c0_i32_1 = arith.constant 0 : i32
    return %c0_i32, %c0_i32_0 : i32, i32
  }
  func.func @transform_4(%arg0: i32) -> (i32, i32) {
    %c0_i32 = arith.constant 0 : i32
    %c0_i32_0 = arith.constant 0 : i32
    return %arg0, %c0_i32 : i32, i32
  }
}

</mosaic_0001>

<bundles_post_ra>
// kernel: eeg_graph_conv_net.1
= control target key start
LH: loop header
LB: loop body
LE: loop exit
PB: predicated region body
PF: predicated region fallthrough
CT: control target
= control target key end

     0   :  { %9 = vsyncpa [#allocation3], 0  ;;  %s4215_s0 = inlined_call_operand.hbm [shape: f32[256,128], index: 0, kind: input, shape index: {}]   ;;  %s4216_s1 = inlined_call_operand.hbm [shape: f32[256,128], index: 1, kind: input, shape index: {}]   ;;  %s4217_s2 = inlined_call_operand.hbm [shape: f32[896,128], index: 2, kind: input, shape index: {}]   ;;  %s4218_s3 = inlined_call_operand.vmem [shape: f32[8,128], index: 3, kind: input, shape index: {}]   ;;  %s4219_s4 = inlined_call_operand.vmem [shape: f32[32,128], index: 4, kind: output, shape index: {}]  }
   0x1   :  { %11 = vsyncpa [#allocation3 + $0x1], 0 }
   0x2   :  { %12 = vsyncpa [#allocation5], 0 }
   0x3   :  { %14 = vsyncpa [#allocation5 + $0x1], 0  ;;  %s3756_s15 = smov 0   ;;  %s3758_s16 = smov 0  }
   0x4   :  { %s3760_s17 = smov 0   ;;  %s3762_s18 = smov 0  }
   0x5 LB: > { %s3775_s19 = sadd.s32 4294967295, %s3724_s18   ;;  %p40_p0 = scmp.ne.s32.totalorder %s3716_s16, %s3712_s15  ;;  %s3724_s18 = sphi %s3762_s18, %s4234_s18   ;;  %s3720_s17 = sphi %s3760_s17, %s4233_s17   ;;  %s3716_s16 = sphi %s3758_s16, %s4232_s16   ;;  %s3712_s15 = sphi %s3756_s15, %s4231_s15  }
   0x6   : > { %p4220_p1 = scmp.eq.s32.totalorder %s3775_s19, 0  ;;  %p2281_p2 = scmp.ge.s32.totalorder %s3724_s18, 1 }
   0x7   : > { %p145_p3 = scmp.lt.s32.totalorder %s3724_s18, 3  ;;  %s3726_s22 = smov [#allocation6]  }
   0x8   : > { %p3783_p4 = por %p4220_p1, %p40_p0  ;;  %s157_s23 = sshll.u32 %s3726_s22, 4  ;;  %s158_s23 = int_to_ptr.vmem [resolvable:$true] %s157_s23 }
   0x9   : > { %p3787_p5 = pnand %p2281_p2, %p145_p3  ;;  %s3800_s25 = sadd.s32 1, %s3724_s18  }
   0xa   : > { %s4223_s20 = scalar_select %p3783_p4, 1, 0 }
   0xb   : > { %s4224_s21 = scalar_select %p3787_p5, 1, 0 }
   0xc   : > { %p3530_p6 = pneg %p3787_p5  ;;  %s27_s26 = sadd.s32 1, %s3720_s17 }
   0xd   : > { %s24_s27 = ssub.s32 %s3724_s18, %s3800_s25  ;;  %s3594_s30 = scalar_lea.hbm %s4217_s2, 14336 }
   0xe   : > { %p3795_p7 = pnand %p3530_p6, %p4220_p1  ;;  %p3595_p8 = scmp.ne.s32.totalorder %s4217_s2, %s3594_s30 }
   0xf   : > { %p3601_p12 = scmp.lt.u32.totalorder %s3594_s30, %s4217_s2 }
  0x10   : > { %p3596_p9 = pneg %p3795_p7 }
  0x12   : > { %p3597_p10 = pnand %p3596_p9, %p3595_p8 }
  0x14   : > { %p3598_p11 = pneg %p3597_p10 }
  0x16   : > { %p3603_p13 = pnand %p3601_p12, %p3598_p11 }
  0x18   : > { %3606 = shalt.err (!%p3603_p13)
}
  0x19   : > { %s3607_s9 = scalar_lea.vmem %s158_s23, 14336  ;;  %p3615_p6 = scmp.lt.s32.totalorder %s158_s23, %s158_s23 }
  0x1a   : > { %p3608_p0 = scmp.ne.s32.totalorder %s158_s23, %s3607_s9  ;;  %p3616_p1 = scmp.lt.s32.totalorder %s3607_s9, %s3607_s9 }
  0x1c   : > { %p3610_p2 = pnand %p3608_p0, %p3596_p9  ;;  %p3617_p4 = por %p3616_p1, %p3615_p6 }
  0x1e   : > { %p3611_p3 = pneg %p3610_p2 }
  0x20   : > { %p3618_p5 = pnand %p3617_p4, %p3611_p3 }
  0x22   : > { %3621 = shalt.err (!%p3618_p5)
}
  0x23   : > { %s3727_s10 = smov 128   ;;  %s3728_s11 = smov 8  }
  0x24   : > { %3533 = dma.hbm_to_vmem [thread:$0]  (!%p3795_p7), %s4217_s2, 14336, %s158_s23, [#allocation5], %s3727_s10, %s3727_s10, %s3728_s11  }
  0x25   : > { %p25_p1 = scmp.eq.s32.totalorder %s24_s27, 0  ;;  %p34_p4 = scmp.ne.s32.totalorder %s3720_s17, %s3716_s16 }
  0x26   : > { %p35_p5 = scmp.eq.s32.totalorder %s3724_s18, 0  ;;  %p3542_p8 = scmp.lt.s32.totalorder %s3724_s18, 2 }
  0x27   : > { %s3829_s14 = scalar_select %p25_p1, %s3720_s17, %s27_s26  }
  0x28   : > { %p36_p9 = por %p35_p5, %p34_p4  ;;  %s174_s15 = sand.u32 1, %s3720_s17  }
  0x29   : > { %s2284_s22 = sshll.u32 %s174_s15, 7  ;;  %s2305_s28 = sshll.u32 %s3724_s18, 11 }
  0x2a   : > { %s3836_s24 = scalar_lea.hbm %s4215_s0, %s2305_s28  ;;  %s178_s5 = scalar_lea.vmem [#allocation2], %s2284_s22 }
  0x2b   : > { %s185_s23 = sshll.u32 %s178_s5, 4  ;;  %p3840_p7 = pnand %p3542_p8, %p36_p9  ;;  %s3838_s23 = int_to_ptr.vmem [resolvable:$true] %s185_s23 }
  0x2c   : > { %s3847_s7 = scalar_lea.hbm %s4216_s1, %s2305_s28  ;;  %s199_s8 = scalar_lea.vmem [#allocation4], %s2284_s22 }
  0x2d   : > { %s3849_s9 = sshll.u32 %s199_s8, 4  ;;  %s3851_s12 = scalar_lea.sflag [#allocation3], %s174_s15  ;;  %s3883_s9 = int_to_ptr.vmem [resolvable:$true] %s3849_s9 }
  0x2e   : > { %s3622_s13 = scalar_lea.hbm %s3836_s24, 2048  ;;  %p3624_p11 = pneg %p3840_p7 }
  0x2f   : > { %p3623_p10 = scmp.ne.s32.totalorder %s3836_s24, %s3622_s13  ;;  %s3627_s5 = scalar_lea.hbm %s4215_s0, 4096 }
  0x30   : > { %p3628_p0 = scmp.lt.u32.totalorder %s3836_s24, %s4215_s0  ;;  %p3629_p2 = scmp.lt.u32.totalorder %s3627_s5, %s3622_s13 }
  0x31   : > { %p3625_p12 = pnand %p3624_p11, %p3623_p10  ;;  %p3631_p6 = scmp.lt.u32.totalorder %s3622_s13, %s3836_s24 }
  0x32   : > { %p3630_p3 = por %p3629_p2, %p3628_p0 }
  0x33   : > { %p3626_p13 = pneg %p3625_p12 }
  0x34   : > { %p3632_p1 = por %p3631_p6, %p3630_p3 }
  0x36   : > { %p3633_p4 = pnand %p3632_p1, %p3626_p13 }
  0x38   : > { %3636 = shalt.err (!%p3633_p4)
}
  0x39   : > { %s3637_s15 = scalar_lea.vmem %s3838_s23, 2048  ;;  %s3729_s22 = smov [#allocation2]  }
  0x3a   : > { %p3638_p5 = scmp.ne.s32.totalorder %s3838_s23, %s3637_s15  ;;  %s3642_s6 = sshll.u32 %s3729_s22, 4  ;;  %s3643_s6 = int_to_ptr.vmem [resolvable:$false] %s3642_s6 }
  0x3b   : > { %s3644_s8 = scalar_lea.vmem %s3643_s6, 4096  ;;  %p3645_p10 = scmp.lt.s32.totalorder %s3838_s23, %s3643_s6 }
  0x3c   : > { %p3640_p8 = pnand %p3638_p5, %p3624_p11  ;;  %p3646_p12 = scmp.lt.s32.totalorder %s3644_s8, %s3637_s15 }
  0x3e   : > { %p3641_p9 = pneg %p3640_p8  ;;  %p3647_p0 = por %p3646_p12, %p3645_p10 }
  0x40   : > { %p3648_p2 = pnand %p3647_p0, %p3641_p9 }
  0x42   : > { %3651 = shalt.err (!%p3648_p2)
}
  0x43   : > { %3537 = dma.hbm_to_vmem [thread:$0]  (!%p3840_p7), %s3836_s24, 2048, %s3838_s23, %s3851_s12, %s3727_s10, %s3727_s10, %s3728_s11  }
  0x44   : > { %s195_s13 = sand.u32 1, %s3724_s18   ;;  %s3652_s30 = scalar_lea.hbm %s3847_s7, 2048 }
  0x45   : > { %s3886_s29 = scalar_lea.sflag [#allocation5], %s195_s13  ;;  %p3653_p13 = scmp.ne.s32.totalorder %s3847_s7, %s3652_s30 }
  0x46   : > { %s3657_s28 = scalar_lea.hbm %s4216_s1, 4096  ;;  %p3658_p1 = scmp.lt.u32.totalorder %s3847_s7, %s4216_s1 }
  0x47   : > { %p3655_p3 = pnand %p3653_p13, %p3624_p11  ;;  %p3659_p4 = scmp.lt.u32.totalorder %s3657_s28, %s3652_s30 }
  0x48   : > { %p3661_p8 = scmp.lt.u32.totalorder %s3652_s30, %s3847_s7 }
  0x49   : > { %p3656_p6 = pneg %p3655_p3  ;;  %p3660_p5 = por %p3659_p4, %p3658_p1 }
  0x4b   : > { %p3662_p9 = por %p3661_p8, %p3660_p5 }
  0x4d   : > { %p3663_p10 = pnand %p3662_p9, %p3656_p6 }
  0x4f   : > { %3666 = shalt.err (!%p3663_p10)
}
  0x50   : > { %s3667_s18 = scalar_lea.vmem %s3883_s9, 2048  ;;  %s3730_s24 = smov [#allocation4]  }
  0x51   : > { %p3668_p12 = scmp.ne.s32.totalorder %s3883_s9, %s3667_s18  ;;  %s3672_s23 = sshll.u32 %s3730_s24, 4  ;;  %s3673_s23 = int_to_ptr.vmem [resolvable:$false] %s3672_s23 }
  0x52   : > { %s3674_s12 = scalar_lea.vmem %s3673_s23, 4096  ;;  %p3675_p13 = scmp.lt.s32.totalorder %s3883_s9, %s3673_s23 }
  0x53   : > { %p3670_p0 = pnand %p3668_p12, %p3624_p11  ;;  %p3676_p3 = scmp.lt.s32.totalorder %s3674_s12, %s3667_s18 }
  0x55   : > { %p3671_p2 = pneg %p3670_p0  ;;  %p3677_p1 = por %p3676_p3, %p3675_p13 }
  0x57   : > { %p3678_p4 = pnand %p3677_p1, %p3671_p2 }
  0x59   : > { %3681 = shalt.err (!%p3678_p4)
}
  0x5a   : > { %3540 = dma.hbm_to_vmem [thread:$0]  (!%p3840_p7), %s3847_s7, 2048, %s3883_s9, %s3886_s29, %s3727_s10, %s3727_s10, %s3728_s11  }
  0x5b   : > { %p4227_p11 = scmp.ne.s32.totalorder %s4224_s21, 0 }
  0x5c   : > { %s220_s6 = sand.u32 (!%p4227_p11), 1, %s3716_s16   ;;  %p4228_p6 = scmp.ne.s32.totalorder (!%p4227_p11), %s4223_s20, 0 }
  0x5d   : > { %218 = sbr.rel (%p4227_p11) target bundleno = 2707 (0xa93), region = 36  ;;  %s2291_s8 = sshll.u32 (!%p4227_p11), %s220_s6, 7 }
  0x5e   : > { %s221_s13 = scalar_lea.sflag (!%p4227_p11), [#allocation3], %s220_s6  ;;  %s3918_s30 = scalar_lea.vmem (!%p4227_p11), [#allocation2], %s2291_s8 }
  0x64   : > { %3699 = dma.done.wait (%p4228_p6), %s221_s13, 2048  }
  0x65   : > { %3701 = vsyncadd (%p4228_p6), %s221_s13, 4294965248  ;;  %s229_s26 = sand.u32 1, %s3775_s19   ;;  %s3925_s10 = scalar_lea.vmem [#allocation4], %s2291_s8 }
  0x66   : > { %s230_s5 = scalar_lea.sflag [#allocation5], %s229_s26 }
  0x67   : > { %3703 = dma.done.wait (%p4228_p6), %s230_s5, 2048  }
  0x68   : > { %3705 = vsyncadd (%p4228_p6), %s230_s5, 4294965248  ;;  %p4229_p7 = scmp.eq.s32.totalorder %s3775_s19, 0 }
  0x6a   : > { %3707 = dma.done.wait (%p4229_p7), [#allocation5], 14336   ;;  %p4230_p5 = pmov %p4229_p7 }
  0x6b   : > { %v307_v0 = vld [vmem:[#allocation6] sm:$0xff]  ;;  %v308_v1 = vld [vmem:[#allocation6 + $0x8] sm:$0xff]  ;;  %v309_v2 = vld [vmem:[#allocation6 + $0x10] sm:$0xff]  ;;  %s2294_s23 = sshll.u32 %s3775_s19, 1 }
  0x6c   : > { %3709 = vsyncadd (%p4230_p5), [#allocation5], 4294952960  ;;  %v3170_v3 = vpack.c.bf16 %v308_v1, %v307_v0  ;;  %v310_v4 = vld [vmem:[#allocation6 + $0x18] sm:$0xff]  ;;  %v311_v6 = vld [vmem:[#allocation6 + $0x20] sm:$0xff]  ;;  %p270_p8 = scmp.lt.s32.totalorder %s2294_s23, 3 }
  0x6d   : > { %v3174_v5 = vpack.c.bf16 %v310_v4, %v309_v2  ;;  %v312_v7 = vld [vmem:[#allocation6 + $0x28] sm:$0xff]  ;;  %v291_v9 = vld [vmem:[%s3918_s30] sm:$0xff]  ;;  %v313_v10 = vld [vmem:[#allocation6 + $0x30] sm:$0xff] }
  0x6e   : > { %3171 = vmatprep.subr.bf16.mxu0 %v3170_v3  ;;  %v3178_v8 = vpack.c.bf16 %v312_v7, %v311_v6  ;;  %v314_v11 = vld [vmem:[#allocation6 + $0x38] sm:$0xff]  ;;  %2649 = vmatprep.mubr.f32.mxu0 %v291_v9  ;;  %v315_v13 = vld [vmem:[#allocation6 + $0x40] sm:$0xff]  ;;  %v316_v14 = vld [vmem:[#allocation6 + $0x48] sm:$0xff]  ;;  %s4236_s23 = smov (!%p270_p8, %s2294_s23), 3 }
  0x6f   : > { %3173 = vmatpush3.bf16.msra.mxu0 %v3170_v3  ;;  %v3182_v12 = vpack.c.bf16 %v314_v11, %v313_v10  ;;  %v3186_v15 = vpack.c.bf16 %v316_v14, %v315_v13  ;;  %v317_v16 = vld [vmem:[#allocation6 + $0x50] sm:$0xff]  ;;  %v318_v17 = vld [vmem:[#allocation6 + $0x58] sm:$0xff]  ;;  %v319_v19 = vld [vmem:[#allocation6 + $0x60] sm:$0xff]  ;;  %s2295_s12 = sshll.u32 %s4236_s23, 3 }
  0x70   : > { %3175 = vmatprep.subr.bf16.mxu0 %v3174_v5  ;;  %v3190_v18 = vpack.c.bf16 %v318_v17, %v317_v16  ;;  %v320_v20 = vld [vmem:[#allocation6 + $0x68] sm:$0xff]  ;;  %v321_v22 = vld [vmem:[#allocation6 + $0x70] sm:$0xff]  ;;  %v322_v23 = vld [vmem:[#allocation6 + $0x78] sm:$0xff]  ;;  %s273_s26 = scalar_lea.vmem %s4219_s4, %s2295_s12 }
  0x71   : > { %v3194_v21 = vpack.c.bf16 %v320_v20, %v319_v19  ;;  %v3198_v24 = vpack.c.bf16 %v322_v23, %v321_v22  ;;  %v292_v25 = vld [vmem:[%s3918_s30 + $0x8] sm:$0xff]  ;;  %v293_v26 = vld [vmem:[%s3918_s30 + $0x10] sm:$0xff]  ;;  %v294_v27 = vld [vmem:[%s3918_s30 + $0x18] sm:$0xff] }
  0x72   : > { %v295_v28 = vld [vmem:[%s3918_s30 + $0x20] sm:$0xff]  ;;  %v296_v29 = vld [vmem:[%s3918_s30 + $0x28] sm:$0xff]  ;;  %v297_v30 = vld [vmem:[%s3918_s30 + $0x30] sm:$0xff] }
  0x73   : > { %3177 = vmatpush3.bf16.msra.mxu0 %v3174_v5  ;;  %v298_v31 = vld [vmem:[%s3918_s30 + $0x38] sm:$0xff]  ;;  %v299_v32 = vld [vmem:[%s3918_s30 + $0x40] sm:$0xff]  ;;  %v300_v33 = vld [vmem:[%s3918_s30 + $0x48] sm:$0xff] }
  0x74   : > { %3179 = vmatprep.subr.bf16.mxu0 %v3178_v8  ;;  %v301_v34 = vld [vmem:[%s3918_s30 + $0x50] sm:$0xff]  ;;  %v302_v35 = vld [vmem:[%s3918_s30 + $0x58] sm:$0xff]  ;;  %v303_v36 = vld [vmem:[%s3918_s30 + $0x60] sm:$0xff] }
  0x75   : > { %v304_v37 = vld [vmem:[%s3918_s30 + $0x68] sm:$0xff]  ;;  %v305_v38 = vld [vmem:[%s3918_s30 + $0x70] sm:$0xff]  ;;  %v306_v39 = vld [vmem:[%s3918_s30 + $0x78] sm:$0xff] }
  0x76   : > { %v3952_v40 = vld [vmem:[%s3925_s10] sm:$0xff]  ;;  %v667_v42 = vld [vmem:[#allocation6 + $0x88] sm:$0xff]  ;;  %v668_v43 = vld [vmem:[#allocation6 + $0x90] sm:$0xff] }
  0x77   : > { %3181 = vmatpush3.bf16.msra.mxu0 %v3178_v8  ;;  %2705 = vmatprep.mubr.f32.mxu1 %v3952_v40  ;;  %v666_v41 = vld [vmem:[#allocation6 + $0x80] sm:$0xff]  ;;  %v669_v45 = vld [vmem:[#allocation6 + $0x98] sm:$0xff]  ;;  %v671_v48 = vld [vmem:[#allocation6 + $0xa8] sm:$0xff] }
  0x78   : > { %3183 = vmatprep.subr.bf16.mxu0 %v3182_v12  ;;  %v3234_v44 = vpack.c.bf16 %v667_v42, %v666_v41  ;;  %v3238_v46 = vpack.c.bf16 %v669_v45, %v668_v43  ;;  %v670_v47 = vld [vmem:[#allocation6 + $0xa0] sm:$0xff]  ;;  %v672_v50 = vld [vmem:[#allocation6 + $0xb0] sm:$0xff]  ;;  %v673_v51 = vld [vmem:[#allocation6 + $0xb8] sm:$0xff] }
  0x79   : > { %v3242_v49 = vpack.c.bf16 %v671_v48, %v670_v47  ;;  %v3246_v52 = vpack.c.bf16 %v673_v51, %v672_v50  ;;  %v674_v53 = vld [vmem:[#allocation6 + $0xc0] sm:$0xff]  ;;  %v675_v54 = vld [vmem:[#allocation6 + $0xc8] sm:$0xff]  ;;  %v676_v56 = vld [vmem:[#allocation6 + $0xd0] sm:$0xff] }
  0x7a   : > { %v3250_v55 = vpack.c.bf16 %v675_v54, %v674_v53  ;;  %v677_v57 = vld [vmem:[#allocation6 + $0xd8] sm:$0xff]  ;;  %v3956_v19 = vld [vmem:[%s3925_s10 + $0x8] sm:$0xff]  ;;  %v3959_v20 = vld [vmem:[%s3925_s10 + $0x10] sm:$0xff] }
  0x7b   : > { %3185 = vmatpush3.bf16.msra.mxu0 %v3182_v12  ;;  %v3254_v58 = vpack.c.bf16 %v677_v57, %v676_v56  ;;  %v3967_v22 = vld [vmem:[%s3925_s10 + $0x20] sm:$0xff]  ;;  %v3972_v23 = vld [vmem:[%s3925_s10 + $0x28] sm:$0xff] }
  0x7c   : > { %3187 = vmatprep.subr.bf16.mxu0 %v3186_v15  ;;  %v4019_v41 = vld [vmem:[%s4218_s3] ss:$0 sm:$0xff] }
  0x7f   : > { %3189 = vmatpush3.bf16.msra.mxu0 %v3186_v15 }
  0x80   : > { %3191 = vmatprep.subr.bf16.mxu0 %v3190_v18 }
  0x83   : > { %3193 = vmatpush3.bf16.msra.mxu0 %v3190_v18 }
  0x84   : > { %3195 = vmatprep.subr.bf16.mxu0 %v3194_v21 }
  0x87   : > { %3197 = vmatpush3.bf16.msra.mxu0 %v3194_v21  ;;  %v3964_v21 = vld [vmem:[%s3925_s10 + $0x18] sm:$0xff] }
  0x88   : > { %3199 = vmatprep.subr.bf16.mxu0 %v3198_v24 }
  0x8b   : > { %3201 = vmatpush3.bf16.msra.mxu0 %v3198_v24  ;;  %v3975_v24 = vld [vmem:[%s3925_s10 + $0x30] sm:$0xff] }
  0x8c   : > { %3235 = vmatprep.subr.bf16.mxu0 %v3234_v44 }
  0x8e   : > { %2650 = vmatmul.mubr.f32.vlgmr.msra.gmra.mrb[0].mxu0 %v292_v25  ;;  %v3980_v25 = vld [vmem:[%s3925_s10 + $0x38] sm:$0xff] }
  0x8f   : > { %2652 = vmatprep.mubr.f32.mxu0 %v293_v26  ;;  %3237 = vmatpush3.bf16.msra.mxu0 %v3234_v44  ;;  %v3983_v26 = vld [vmem:[%s3925_s10 + $0x40] sm:$0xff] }
  0x90   : > { %3239 = vmatprep.subr.bf16.mxu0 %v3238_v46 }
  0x92   : > { %2653 = vmatmul.mubr.f32.gmra.mrb[2].mxu0 %v294_v27  ;;  %v3988_v27 = vld [vmem:[%s3925_s10 + $0x48] sm:$0xff] }
  0x93   : > { %2655 = vmatprep.mubr.f32.mxu0 %v295_v28  ;;  %3241 = vmatpush3.bf16.msra.mxu0 %v3238_v46  ;;  %v3991_v28 = vld [vmem:[%s3925_s10 + $0x50] sm:$0xff] }
  0x94   : > { %3243 = vmatprep.subr.bf16.mxu0 %v3242_v49 }
  0x96   : > { %2656 = vmatmul.mubr.f32.gmra.mrb[4].mxu0 %v296_v29  ;;  %v3996_v29 = vld [vmem:[%s3925_s10 + $0x58] sm:$0xff] }
  0x97   : > { %2658 = vmatprep.mubr.f32.mxu0 %v297_v30  ;;  %3245 = vmatpush3.bf16.msra.mxu0 %v3242_v49  ;;  %v3999_v30 = vld [vmem:[%s3925_s10 + $0x60] sm:$0xff] }
  0x98   : > { %3247 = vmatprep.subr.bf16.mxu0 %v3246_v52 }
  0x9a   : > { %2659 = vmatmul.mubr.f32.gmra.mrb[6].mxu0 %v298_v31  ;;  %v4004_v31 = vld [vmem:[%s3925_s10 + $0x68] sm:$0xff] }
  0x9b   : > { %2661 = vmatprep.mubr.f32.mxu0 %v299_v32  ;;  %3249 = vmatpush3.bf16.msra.mxu0 %v3246_v52  ;;  %v4007_v32 = vld [vmem:[%s3925_s10 + $0x70] sm:$0xff] }
  0x9c   : > { %3251 = vmatprep.subr.bf16.mxu0 %v3250_v55 }
  0x9e   : > { %2662 = vmatmul.mubr.f32.gmra.mrb[8].mxu0 %v300_v33  ;;  %v4012_v33 = vld [vmem:[%s3925_s10 + $0x78] sm:$0xff] }
  0x9f   : > { %2664 = vmatprep.mubr.f32.mxu0 %v301_v34  ;;  %3253 = vmatpush3.bf16.msra.mxu0 %v3250_v55  ;;  %v678_v34 = vld [vmem:[#allocation6 + $0xe0] sm:$0xff] }
  0xa0   : > { %3255 = vmatprep.subr.bf16.mxu0 %v3254_v58 }
  0xa2   : > { %2665 = vmatmul.mubr.f32.gmra.mrb[10].mxu0 %v302_v35  ;;  %v679_v35 = vld [vmem:[#allocation6 + $0xe8] sm:$0xff] }
  0xa3   : > { %2667 = vmatprep.mubr.f32.mxu0 %v303_v36  ;;  %3257 = vmatpush3.bf16.msra.mxu0 %v3254_v58  ;;  %v3258_v36 = vpack.c.bf16 %v679_v35, %v678_v34 }
  0xa5   : > { %3259 = vmatprep.subr.bf16.mxu0 %v3258_v36 }
  0xa6   : > { %2668 = vmatmul.mubr.f32.gmra.mrb[12].mxu0 %v304_v37  ;;  %v680_v37 = vld [vmem:[#allocation6 + $0xf0] sm:$0xff] }
  0xa7   : > { %2670 = vmatprep.mubr.f32.mxu0 %v305_v38  ;;  %3261 = vmatpush3.bf16.msra.mxu0 %v3258_v36  ;;  %v681_v38 = vld [vmem:[#allocation6 + $0xf8] sm:$0xff] }
  0xaa   : > { %2671 = vmatmul.mubr.f32.gmra.mrb[14].mxu0 %v306_v39  ;;  %v3262_v39 = vpack.c.bf16 %v681_v38, %v680_v37 }
  0xac   : > { %3263 = vmatprep.subr.bf16.mxu0 %v3262_v39 }
  0xad   : > { %3265 = vmatpush3.bf16.msra.mxu0 %v3262_v39 }
 0x161   : > { %v2651_v59 = vpop.f32.mrb[0].mxu0 }
 0x162   : > { %v389_v60 = vpop.f32.mrb[1].mxu0 }
 0x163   : > { %v3202_v61 = vpack.c.bf16 %v2651_v59, %v389_v60 }
 0x165   : > { %v2654_v62 = vpop.f32.mrb[2].mxu0  ;;  %3203 = vmatprep.subr.bf16.mxu1 %v3202_v61 }
 0x166   : > { %v399_v63 = vpop.f32.mrb[3].mxu0  ;;  %3205 = vmatpush3.bf16.msra.mxu1 %v3202_v61 }
 0x167   : > { %v3206_v0 = vpack.c.bf16 %v2654_v62, %v399_v63 }
 0x169   : > { %v2657_v1 = vpop.f32.mrb[4].mxu0  ;;  %3207 = vmatprep.subr.bf16.mxu1 %v3206_v0 }
 0x16a   : > { %v409_v2 = vpop.f32.mrb[5].mxu0  ;;  %3209 = vmatpush3.bf16.msra.mxu1 %v3206_v0 }
 0x16b   : > { %v3210_v3 = vpack.c.bf16 %v2657_v1, %v409_v2 }
 0x16d   : > { %v2660_v4 = vpop.f32.mrb[6].mxu0  ;;  %3211 = vmatprep.subr.bf16.mxu1 %v3210_v3 }
 0x16e   : > { %v419_v5 = vpop.f32.mrb[7].mxu0  ;;  %3213 = vmatpush3.bf16.msra.mxu1 %v3210_v3 }
 0x16f   : > { %v3214_v6 = vpack.c.bf16 %v2660_v4, %v419_v5 }
 0x171   : > { %v2663_v7 = vpop.f32.mrb[8].mxu0  ;;  %3215 = vmatprep.subr.bf16.mxu1 %v3214_v6 }
 0x172   : > { %v429_v8 = vpop.f32.mrb[9].mxu0  ;;  %3217 = vmatpush3.bf16.msra.mxu1 %v3214_v6 }
 0x173   : > { %v3218_v9 = vpack.c.bf16 %v2663_v7, %v429_v8 }
 0x175   : > { %v2666_v10 = vpop.f32.mrb[10].mxu0  ;;  %3219 = vmatprep.subr.bf16.mxu1 %v3218_v9 }
 0x176   : > { %v439_v11 = vpop.f32.mrb[11].mxu0  ;;  %3221 = vmatpush3.bf16.msra.mxu1 %v3218_v9 }
 0x177   : > { %v3222_v12 = vpack.c.bf16 %v2666_v10, %v439_v11 }
 0x179   : > { %v2669_v13 = vpop.f32.mrb[12].mxu0  ;;  %3223 = vmatprep.subr.bf16.mxu1 %v3222_v12 }
 0x17a   : > { %v449_v14 = vpop.f32.mrb[13].mxu0  ;;  %3225 = vmatpush3.bf16.msra.mxu1 %v3222_v12 }
 0x17b   : > { %v3226_v15 = vpack.c.bf16 %v2669_v13, %v449_v14 }
 0x17d   : > { %v2672_v16 = vpop.f32.mrb[14].mxu0  ;;  %3227 = vmatprep.subr.bf16.mxu1 %v3226_v15 }
 0x17e   : > { %v459_v17 = vpop.f32.mrb[15].mxu0  ;;  %3229 = vmatpush3.bf16.msra.mxu1 %v3226_v15 }
 0x17f   : > { %v3230_v18 = vpack.c.bf16 %v2672_v16, %v459_v17 }
 0x181   : > { %3231 = vmatprep.subr.bf16.mxu1 %v3230_v18 }
 0x182   : > { %3233 = vmatpush3.bf16.msra.mxu1 %v3230_v18 }
 0x185   : > { %2706 = vmatmul.mubr.f32.vlgmr.msra.gmra.mrb[0].mxu1 %v3956_v19 }
 0x186   : > { %2708 = vmatprep.mubr.f32.mxu1 %v3959_v20 }
 0x189   : > { %2709 = vmatmul.mubr.f32.gmra.mrb[2].mxu1 %v3964_v21 }
 0x18a   : > { %2711 = vmatprep.mubr.f32.mxu1 %v3967_v22 }
 0x18d   : > { %2712 = vmatmul.mubr.f32.gmra.mrb[4].mxu1 %v3972_v23 }
 0x18e   : > { %2714 = vmatprep.mubr.f32.mxu1 %v3975_v24 }
 0x191   : > { %2715 = vmatmul.mubr.f32.gmra.mrb[6].mxu1 %v3980_v25 }
 0x192   : > { %2717 = vmatprep.mubr.f32.mxu1 %v3983_v26 }
 0x195   : > { %2718 = vmatmul.mubr.f32.gmra.mrb[8].mxu1 %v3988_v27 }
 0x196   : > { %2720 = vmatprep.mubr.f32.mxu1 %v3991_v28 }
 0x199   : > { %2721 = vmatmul.mubr.f32.gmra.mrb[10].mxu1 %v3996_v29 }
 0x19a   : > { %2723 = vmatprep.mubr.f32.mxu1 %v3999_v30 }
 0x19d   : > { %2724 = vmatmul.mubr.f32.gmra.mrb[12].mxu1 %v4004_v31 }
 0x19e   : > { %2726 = vmatprep.mubr.f32.mxu1 %v4007_v32 }
 0x1a1   : > { %2727 = vmatmul.mubr.f32.gmra.mrb[14].mxu1 %v4012_v33 }
 0x1a2   : > { %2817 = vmatprep.mubr.f32.mxu1 %v3952_v40 }
 0x258   : > { %v2707_v42 = vpop.f32.mrb[0].mxu1 }
 0x259   : > { %v545_v43 = vadd.f32 %v2707_v42, %v4019_v41  ;;  %v539_v44 = vpop.f32.mrb[1].mxu1 }
 0x25a   : > { %v540_v45 = vadd.f32 %v4019_v41, %v539_v44 }
 0x25b   : > { %v635_v46 = vmul.f32 0.01, %v545_v43  ;;  %vm619_vm0 = vcmp.ge.f32.partialorder %v545_v43, 0.0 }
 0x25c   : > { %v634_v47 = vmul.f32 0.01, %v540_v45  ;;  %v2710_v48 = vpop.f32.mrb[2].mxu1  ;;  %vm618_vm1 = vcmp.ge.f32.partialorder %v540_v45, 0.0 }
 0x25d   : > { %v555_v49 = vadd.f32 %v2710_v48, %v4019_v41  ;;  %v549_v50 = vpop.f32.mrb[3].mxu1  ;;  %v651_v53 = vsel %vm619_vm0, %v545_v43, %v635_v46 }
 0x25e   : > { %v550_v51 = vadd.f32 %v4019_v41, %v549_v50  ;;  %v650_v52 = vsel %vm618_vm1, %v540_v45, %v634_v47 }
 0x25f   : > { %v637_v54 = vmul.f32 0.01, %v555_v49  ;;  %2761 = vmatprep.mubr.f32.mxu0 %v650_v52  ;;  %vm621_vm3 = vcmp.ge.f32.partialorder %v555_v49, 0.0 }
 0x260   : > { %v636_v55 = vmul.f32 0.01, %v550_v51  ;;  %v2713_v56 = vpop.f32.mrb[4].mxu1  ;;  %2762 = vmatmul.mubr.f32.vlgmr.msra.gmra.mrb[16].mxu0 %v651_v53  ;;  %vm620_vm2 = vcmp.ge.f32.partialorder %v550_v51, 0.0 }
 0x261   : > { %v565_v57 = vadd.f32 %v2713_v56, %v4019_v41  ;;  %v559_v58 = vpop.f32.mrb[5].mxu1  ;;  %v653_v62 = vsel %vm621_vm3, %v555_v49, %v637_v54 }
 0x262   : > { %v560_v59 = vadd.f32 %v4019_v41, %v559_v58  ;;  %v652_v60 = vsel %vm620_vm2, %v550_v51, %v636_v55 }
 0x263   : > { %v639_v61 = vmul.f32 0.01, %v565_v57  ;;  %2764 = vmatprep.mubr.f32.mxu0 %v652_v60  ;;  %vm623_vm5 = vcmp.ge.f32.partialorder %v565_v57, 0.0  ;;  %v1026_v60 = vld [vmem:[#allocation6 + $0x108] sm:$0xff] }
 0x264   : > { %v638_v63 = vmul.f32 0.01, %v560_v59  ;;  %v2716_v0 = vpop.f32.mrb[6].mxu1  ;;  %2765 = vmatmul.mubr.f32.gmra.mrb[18].mxu0 %v653_v62  ;;  %vm622_vm4 = vcmp.ge.f32.partialorder %v560_v59, 0.0 }
 0x265   : > { %v575_v1 = vadd.f32 %v2716_v0, %v4019_v41  ;;  %v569_v2 = vpop.f32.mrb[7].mxu1  ;;  %v655_v6 = vsel %vm623_vm5, %v565_v57, %v639_v61  ;;  %v1027_v61 = vld [vmem:[#allocation6 + $0x110] sm:$0xff] }
 0x266   : > { %v570_v3 = vadd.f32 %v4019_v41, %v569_v2  ;;  %v654_v4 = vsel %vm622_vm4, %v560_v59, %v638_v63  ;;  %v1025_v59 = vld [vmem:[#allocation6 + $0x100] sm:$0xff]  ;;  %v1028_v63 = vld [vmem:[#allocation6 + $0x118] sm:$0xff] }
 0x267   : > { %v641_v5 = vmul.f32 0.01, %v575_v1  ;;  %2767 = vmatprep.mubr.f32.mxu0 %v654_v4  ;;  %vm625_vm7 = vcmp.ge.f32.partialorder %v575_v1, 0.0  ;;  %v3298_v62 = vpack.c.bf16 %v1026_v60, %v1025_v59  ;;  %v3302_v0 = vpack.c.bf16 %v1028_v63, %v1027_v61  ;;  %v1032_v4 = vld [vmem:[#allocation6 + $0x138] sm:$0xff]  ;;  %v4056_v59 = vld [vmem:[%s4218_s3 + $0x1] ss:$0 sm:$0xff] }
 0x268   : > { %v640_v7 = vmul.f32 0.01, %v570_v3  ;;  %v2719_v8 = vpop.f32.mrb[8].mxu1  ;;  %2768 = vmatmul.mubr.f32.gmra.mrb[20].mxu0 %v655_v6  ;;  %vm624_vm6 = vcmp.ge.f32.partialorder %v570_v3, 0.0  ;;  %v1033_v6 = vld [vmem:[#allocation6 + $0x140] sm:$0xff] }
 0x269   : > { %v585_v9 = vadd.f32 %v2719_v8, %v4019_v41  ;;  %v579_v10 = vpop.f32.mrb[9].mxu1  ;;  %v657_v14 = vsel %vm625_vm7, %v575_v1, %v641_v5  ;;  %v1029_v1 = vld [vmem:[#allocation6 + $0x120] sm:$0xff]  ;;  %3299 = vmatprep.subr.bf16.mxu0 %v3298_v62 }
 0x26a   : > { %v580_v11 = vadd.f32 %v4019_v41, %v579_v10  ;;  %v656_v12 = vsel %vm624_vm6, %v570_v3, %v640_v7  ;;  %3301 = vmatpush3.bf16.msra.mxu0 %v3298_v62  ;;  %v1031_v3 = vld [vmem:[#allocation6 + $0x130] sm:$0xff]  ;;  %v1034_v7 = vld [vmem:[#allocation6 + $0x148] sm:$0xff]  ;;  %v1036_v10 = vld [vmem:[#allocation6 + $0x158] sm:$0xff] }
 0x26b   : > { %v643_v13 = vmul.f32 0.01, %v585_v9  ;;  %2770 = vmatprep.mubr.f32.mxu0 %v656_v12  ;;  %vm627_vm9 = vcmp.ge.f32.partialorder %v585_v9, 0.0  ;;  %3303 = vmatprep.subr.bf16.mxu0 %v3302_v0  ;;  %v3310_v5 = vpack.c.bf16 %v1032_v4, %v1031_v3  ;;  %v3314_v8 = vpack.c.bf16 %v1034_v7, %v1033_v6 }
 0x26c   : > { %v642_v15 = vmul.f32 0.01, %v580_v11  ;;  %v2722_v16 = vpop.f32.mrb[10].mxu1  ;;  %2771 = vmatmul.mubr.f32.gmra.mrb[22].mxu0 %v657_v14  ;;  %vm626_vm8 = vcmp.ge.f32.partialorder %v580_v11, 0.0 }
 0x26d   : > { %v595_v17 = vadd.f32 %v2722_v16, %v4019_v41  ;;  %v589_v18 = vpop.f32.mrb[11].mxu1  ;;  %v659_v37 = vsel %vm627_vm9, %v585_v9, %v643_v13  ;;  %v1035_v9 = vld [vmem:[#allocation6 + $0x150] sm:$0xff] }
 0x26e   : > { %v590_v34 = vadd.f32 %v4019_v41, %v589_v18  ;;  %v658_v35 = vsel %vm626_vm8, %v580_v11, %v642_v15  ;;  %3305 = vmatpush3.bf16.msra.mxu0 %v3302_v0  ;;  %v3318_v11 = vpack.c.bf16 %v1036_v10, %v1035_v9 }
 0x26f   : > { %v645_v36 = vmul.f32 0.01, %v595_v17  ;;  %2773 = vmatprep.mubr.f32.mxu0 %v658_v35  ;;  %vm629_vm11 = vcmp.ge.f32.partialorder %v595_v17, 0.0 }
 0x270   : > { %v644_v38 = vmul.f32 0.01, %v590_v34  ;;  %v2725_v39 = vpop.f32.mrb[12].mxu1  ;;  %2774 = vmatmul.mubr.f32.gmra.mrb[24].mxu0 %v659_v37  ;;  %vm628_vm10 = vcmp.ge.f32.partialorder %v590_v34, 0.0 }
 0x271   : > { %v605_v42 = vadd.f32 %v2725_v39, %v4019_v41  ;;  %v599_v43 = vpop.f32.mrb[13].mxu1  ;;  %v661_v47 = vsel %vm629_vm11, %v595_v17, %v645_v36 }
 0x272   : > { %v600_v44 = vadd.f32 %v4019_v41, %v599_v43  ;;  %v660_v45 = vsel %vm628_vm10, %v590_v34, %v644_v38 }
 0x273   : > { %v647_v46 = vmul.f32 0.01, %v605_v42  ;;  %2776 = vmatprep.mubr.f32.mxu0 %v660_v45  ;;  %vm631_vm13 = vcmp.ge.f32.partialorder %v605_v42, 0.0 }
 0x274   : > { %v646_v48 = vmul.f32 0.01, %v600_v44  ;;  %v2728_v49 = vpop.f32.mrb[14].mxu1  ;;  %2777 = vmatmul.mubr.f32.gmra.mrb[26].mxu0 %v661_v47  ;;  %vm630_vm12 = vcmp.ge.f32.partialorder %v600_v44, 0.0 }
 0x275   : > { %v615_v50 = vadd.f32 %v2728_v49, %v4019_v41  ;;  %v609_v51 = vpop.f32.mrb[15].mxu1  ;;  %v663_v55 = vsel %vm631_vm13, %v605_v42, %v647_v46 }
 0x276   : > { %v610_v52 = vadd.f32 %v4019_v41, %v609_v51  ;;  %v662_v53 = vsel %vm630_vm12, %v600_v44, %v646_v48  ;;  %v1030_v41 = vld [vmem:[#allocation6 + $0x128] sm:$0xff] }
 0x277   : > { %v649_v54 = vmul.f32 0.01, %v615_v50  ;;  %2779 = vmatprep.mubr.f32.mxu0 %v662_v53  ;;  %vm633_vm15 = vcmp.ge.f32.partialorder %v615_v50, 0.0  ;;  %v3306_v2 = vpack.c.bf16 %v1030_v41, %v1029_v1  ;;  %v1037_v53 = vld [vmem:[#allocation6 + $0x160] sm:$0xff] }
 0x278   : > { %v648_v56 = vmul.f32 0.01, %v610_v52  ;;  %2780 = vmatmul.mubr.f32.gmra.mrb[28].mxu0 %v663_v55  ;;  %vm632_vm14 = vcmp.ge.f32.partialorder %v610_v52, 0.0 }
 0x279   : > { %v665_v58 = vsel %vm633_vm15, %v615_v50, %v649_v54  ;;  %3307 = vmatprep.subr.bf16.mxu0 %v3306_v2  ;;  %v1038_v54 = vld [vmem:[#allocation6 + $0x168] sm:$0xff] }
 0x27a   : > { %v664_v57 = vsel %vm632_vm14, %v610_v52, %v648_v56  ;;  %3309 = vmatpush3.bf16.msra.mxu0 %v3306_v2  ;;  %v3322_v55 = vpack.c.bf16 %v1038_v54, %v1037_v53  ;;  %v1039_v56 = vld [vmem:[#allocation6 + $0x170] sm:$0xff] }
 0x27b   : > { %2782 = vmatprep.mubr.f32.mxu0 %v664_v57  ;;  %3311 = vmatprep.subr.bf16.mxu0 %v3310_v5  ;;  %v1040_v57 = vld [vmem:[#allocation6 + $0x178] sm:$0xff] }
 0x27c   : > { %2783 = vmatmul.mubr.f32.gmra.mrb[30].mxu0 %v665_v58  ;;  %v3326_v58 = vpack.c.bf16 %v1040_v57, %v1039_v56 }
 0x27e   : > { %3313 = vmatpush3.bf16.msra.mxu0 %v3310_v5 }
 0x27f   : > { %3315 = vmatprep.subr.bf16.mxu0 %v3314_v8 }
 0x282   : > { %3317 = vmatpush3.bf16.msra.mxu0 %v3314_v8 }
 0x283   : > { %3319 = vmatprep.subr.bf16.mxu0 %v3318_v11 }
 0x286   : > { %3321 = vmatpush3.bf16.msra.mxu0 %v3318_v11 }
 0x287   : > { %3323 = vmatprep.subr.bf16.mxu0 %v3322_v55 }
 0x28a   : > { %3325 = vmatpush3.bf16.msra.mxu0 %v3322_v55 }
 0x28b   : > { %3327 = vmatprep.subr.bf16.mxu0 %v3326_v58 }
 0x28e   : > { %3329 = vmatpush3.bf16.msra.mxu0 %v3326_v58 }
 0x333   : > { %v2763_v12 = vpop.f32.mrb[16].mxu0 }
 0x334   : > { %v748_v13 = vpop.f32.mrb[17].mxu0 }
 0x335   : > { %v3266_v14 = vpack.c.bf16 %v2763_v12, %v748_v13 }
 0x337   : > { %v2766_v15 = vpop.f32.mrb[18].mxu0  ;;  %3267 = vmatprep.subr.bf16.mxu1 %v3266_v14 }
 0x338   : > { %v758_v16 = vpop.f32.mrb[19].mxu0  ;;  %3269 = vmatpush3.bf16.msra.mxu1 %v3266_v14 }
 0x339   : > { %v3270_v17 = vpack.c.bf16 %v2766_v15, %v758_v16 }
 0x33b   : > { %v2769_v18 = vpop.f32.mrb[20].mxu0  ;;  %3271 = vmatprep.subr.bf16.mxu1 %v3270_v17 }
 0x33c   : > { %v768_v34 = vpop.f32.mrb[21].mxu0  ;;  %3273 = vmatpush3.bf16.msra.mxu1 %v3270_v17 }
 0x33d   : > { %v3274_v35 = vpack.c.bf16 %v2769_v18, %v768_v34 }
 0x33f   : > { %v2772_v36 = vpop.f32.mrb[22].mxu0  ;;  %3275 = vmatprep.subr.bf16.mxu1 %v3274_v35 }
 0x340   : > { %v778_v37 = vpop.f32.mrb[23].mxu0  ;;  %3277 = vmatpush3.bf16.msra.mxu1 %v3274_v35 }
 0x341   : > { %v3278_v38 = vpack.c.bf16 %v2772_v36, %v778_v37 }
 0x343   : > { %v2775_v39 = vpop.f32.mrb[24].mxu0  ;;  %3279 = vmatprep.subr.bf16.mxu1 %v3278_v38 }
 0x344   : > { %v788_v42 = vpop.f32.mrb[25].mxu0  ;;  %3281 = vmatpush3.bf16.msra.mxu1 %v3278_v38 }
 0x345   : > { %v3282_v43 = vpack.c.bf16 %v2775_v39, %v788_v42 }
 0x347   : > { %v2778_v44 = vpop.f32.mrb[26].mxu0  ;;  %3283 = vmatprep.subr.bf16.mxu1 %v3282_v43 }
 0x348   : > { %v798_v45 = vpop.f32.mrb[27].mxu0  ;;  %3285 = vmatpush3.bf16.msra.mxu1 %v3282_v43 }
 0x349   : > { %v3286_v46 = vpack.c.bf16 %v2778_v44, %v798_v45 }
 0x34b   : > { %v2781_v47 = vpop.f32.mrb[28].mxu0  ;;  %3287 = vmatprep.subr.bf16.mxu1 %v3286_v46 }
 0x34c   : > { %v808_v48 = vpop.f32.mrb[29].mxu0  ;;  %3289 = vmatpush3.bf16.msra.mxu1 %v3286_v46 }
 0x34d   : > { %v3290_v49 = vpack.c.bf16 %v2781_v47, %v808_v48 }
 0x34f   : > { %v2784_v50 = vpop.f32.mrb[30].mxu0  ;;  %3291 = vmatprep.subr.bf16.mxu1 %v3290_v49 }
 0x350   : > { %v818_v51 = vpop.f32.mrb[31].mxu0  ;;  %3293 = vmatpush3.bf16.msra.mxu1 %v3290_v49 }
 0x351   : > { %v3294_v52 = vpack.c.bf16 %v2784_v50, %v818_v51 }
 0x353   : > { %3295 = vmatprep.subr.bf16.mxu1 %v3294_v52 }
 0x354   : > { %3297 = vmatpush3.bf16.msra.mxu1 %v3294_v52 }
 0x357   : > { %2818 = vmatmul.mubr.f32.vlgmr.msra.gmra.mrb[16].mxu1 %v3956_v19 }
 0x358   : > { %2820 = vmatprep.mubr.f32.mxu1 %v3959_v20 }
 0x35b   : > { %2821 = vmatmul.mubr.f32.gmra.mrb[18].mxu1 %v3964_v21 }
 0x35c   : > { %2823 = vmatprep.mubr.f32.mxu1 %v3967_v22 }
 0x35f   : > { %2824 = vmatmul.mubr.f32.gmra.mrb[20].mxu1 %v3972_v23 }
 0x360   : > { %2826 = vmatprep.mubr.f32.mxu1 %v3975_v24 }
 0x363   : > { %2827 = vmatmul.mubr.f32.gmra.mrb[22].mxu1 %v3980_v25 }
 0x364   : > { %2829 = vmatprep.mubr.f32.mxu1 %v3983_v26 }
 0x367   : > { %2830 = vmatmul.mubr.f32.gmra.mrb[24].mxu1 %v3988_v27 }
 0x368   : > { %2832 = vmatprep.mubr.f32.mxu1 %v3991_v28 }
 0x36b   : > { %2833 = vmatmul.mubr.f32.gmra.mrb[26].mxu1 %v3996_v29 }
 0x36c   : > { %2835 = vmatprep.mubr.f32.mxu1 %v3999_v30 }
 0x36f   : > { %2836 = vmatmul.mubr.f32.gmra.mrb[28].mxu1 %v4004_v31 }
 0x370   : > { %2838 = vmatprep.mubr.f32.mxu1 %v4007_v32 }
 0x373   : > { %2839 = vmatmul.mubr.f32.gmra.mrb[30].mxu1 %v4012_v33 }
 0x374   : > { %2929 = vmatprep.mubr.f32.mxu1 %v3952_v40 }
 0x42a   : > { %v2819_v60 = vpop.f32.mrb[16].mxu1 }
 0x42b   : > { %v904_v61 = vadd.f32 %v2819_v60, %v4056_v59  ;;  %v898_v62 = vpop.f32.mrb[17].mxu1 }
 0x42c   : > { %v899_v63 = vadd.f32 %v4056_v59, %v898_v62 }
 0x42d   : > { %v994_v0 = vmul.f32 0.01, %v904_v61  ;;  %vm978_vm0 = vcmp.ge.f32.partialorder %v904_v61, 0.0 }
 0x42e   : > { %v993_v1 = vmul.f32 0.01, %v899_v63  ;;  %v2822_v41 = vpop.f32.mrb[18].mxu1  ;;  %vm977_vm1 = vcmp.ge.f32.partialorder %v899_v63, 0.0 }
 0x42f   : > { %v914_v2 = vadd.f32 %v2822_v41, %v4056_v59  ;;  %v908_v3 = vpop.f32.mrb[19].mxu1  ;;  %v1010_v6 = vsel %vm978_vm0, %v904_v61, %v994_v0 }
 0x430   : > { %v909_v4 = vadd.f32 %v4056_v59, %v908_v3  ;;  %v1009_v5 = vsel %vm977_vm1, %v899_v63, %v993_v1 }
 0x431   : > { %v996_v7 = vmul.f32 0.01, %v914_v2  ;;  %2873 = vmatprep.mubr.f32.mxu0 %v1009_v5  ;;  %vm980_vm3 = vcmp.ge.f32.partialorder %v914_v2, 0.0 }
 0x432   : > { %v995_v8 = vmul.f32 0.01, %v909_v4  ;;  %v2825_v9 = vpop.f32.mrb[20].mxu1  ;;  %2874 = vmatmul.mubr.f32.vlgmr.msra.gmra.mrb[32].mxu0 %v1010_v6  ;;  %vm979_vm2 = vcmp.ge.f32.partialorder %v909_v4, 0.0 }
 0x433   : > { %v924_v10 = vadd.f32 %v2825_v9, %v4056_v59  ;;  %v918_v11 = vpop.f32.mrb[21].mxu1  ;;  %v1012_v15 = vsel %vm980_vm3, %v914_v2, %v996_v7 }
 0x434   : > { %v919_v12 = vadd.f32 %v4056_v59, %v918_v11  ;;  %v1011_v13 = vsel %vm979_vm2, %v909_v4, %v995_v8 }
 0x435   : > { %v998_v14 = vmul.f32 0.01, %v924_v10  ;;  %2876 = vmatprep.mubr.f32.mxu0 %v1011_v13  ;;  %vm982_vm5 = vcmp.ge.f32.partialorder %v924_v10, 0.0  ;;  %v1385_v13 = vld [vmem:[#allocation6 + $0x188] sm:$0xff] }
 0x436   : > { %v997_v16 = vmul.f32 0.01, %v919_v12  ;;  %v2828_v17 = vpop.f32.mrb[22].mxu1  ;;  %2877 = vmatmul.mubr.f32.gmra.mrb[34].mxu0 %v1012_v15  ;;  %vm981_vm4 = vcmp.ge.f32.partialorder %v919_v12, 0.0 }
 0x437   : > { %v934_v18 = vadd.f32 %v2828_v17, %v4056_v59  ;;  %v928_v34 = vpop.f32.mrb[23].mxu1  ;;  %v1014_v38 = vsel %vm982_vm5, %v924_v10, %v998_v14  ;;  %v1386_v14 = vld [vmem:[#allocation6 + $0x190] sm:$0xff] }
 0x438   : > { %v929_v35 = vadd.f32 %v4056_v59, %v928_v34  ;;  %v1013_v36 = vsel %vm981_vm4, %v919_v12, %v997_v16  ;;  %v1384_v12 = vld [vmem:[#allocation6 + $0x180] sm:$0xff]  ;;  %v1387_v16 = vld [vmem:[#allocation6 + $0x198] sm:$0xff] }
 0x439   : > { %v1000_v37 = vmul.f32 0.01, %v934_v18  ;;  %2879 = vmatprep.mubr.f32.mxu0 %v1013_v36  ;;  %vm984_vm7 = vcmp.ge.f32.partialorder %v934_v18, 0.0  ;;  %v3362_v15 = vpack.c.bf16 %v1385_v13, %v1384_v12  ;;  %v3366_v17 = vpack.c.bf16 %v1387_v16, %v1386_v14  ;;  %v1391_v36 = vld [vmem:[#allocation6 + $0x1b8] sm:$0xff] }
 0x43a   : > { %v999_v39 = vmul.f32 0.01, %v929_v35  ;;  %v2831_v42 = vpop.f32.mrb[24].mxu1  ;;  %2880 = vmatmul.mubr.f32.gmra.mrb[36].mxu0 %v1014_v38  ;;  %vm983_vm6 = vcmp.ge.f32.partialorder %v929_v35, 0.0  ;;  %v1392_v38 = vld [vmem:[#allocation6 + $0x1c0] sm:$0xff] }
 0x43b   : > { %v944_v43 = vadd.f32 %v2831_v42, %v4056_v59  ;;  %v938_v44 = vpop.f32.mrb[25].mxu1  ;;  %v1016_v48 = vsel %vm984_vm7, %v934_v18, %v1000_v37  ;;  %v1388_v18 = vld [vmem:[#allocation6 + $0x1a0] sm:$0xff]  ;;  %3363 = vmatprep.subr.bf16.mxu0 %v3362_v15 }
 0x43c   : > { %v939_v45 = vadd.f32 %v4056_v59, %v938_v44  ;;  %v1015_v46 = vsel %vm983_vm6, %v929_v35, %v999_v39  ;;  %3365 = vmatpush3.bf16.msra.mxu0 %v3362_v15  ;;  %v1390_v35 = vld [vmem:[#allocation6 + $0x1b0] sm:$0xff]  ;;  %v1393_v39 = vld [vmem:[#allocation6 + $0x1c8] sm:$0xff]  ;;  %v1395_v44 = vld [vmem:[#allocation6 + $0x1d8] sm:$0xff] }
 0x43d   : > { %v1002_v47 = vmul.f32 0.01, %v944_v43  ;;  %2882 = vmatprep.mubr.f32.mxu0 %v1015_v46  ;;  %vm986_vm9 = vcmp.ge.f32.partialorder %v944_v43, 0.0  ;;  %3367 = vmatprep.subr.bf16.mxu0 %v3366_v17  ;;  %v3374_v37 = vpack.c.bf16 %v1391_v36, %v1390_v35  ;;  %v3378_v42 = vpack.c.bf16 %v1393_v39, %v1392_v38 }
 0x43e   : > { %v1001_v49 = vmul.f32 0.01, %v939_v45  ;;  %v2834_v50 = vpop.f32.mrb[26].mxu1  ;;  %2883 = vmatmul.mubr.f32.gmra.mrb[38].mxu0 %v1016_v48  ;;  %vm985_vm8 = vcmp.ge.f32.partialorder %v939_v45, 0.0 }
 0x43f   : > { %v954_v51 = vadd.f32 %v2834_v50, %v4056_v59  ;;  %v948_v52 = vpop.f32.mrb[27].mxu1  ;;  %v1018_v56 = vsel %vm986_vm9, %v944_v43, %v1002_v47  ;;  %v1394_v43 = vld [vmem:[#allocation6 + $0x1d0] sm:$0xff] }
 0x440   : > { %v949_v53 = vadd.f32 %v4056_v59, %v948_v52  ;;  %v1017_v54 = vsel %vm985_vm8, %v939_v45, %v1001_v49  ;;  %3369 = vmatpush3.bf16.msra.mxu0 %v3366_v17  ;;  %v3382_v45 = vpack.c.bf16 %v1395_v44, %v1394_v43 }
 0x441   : > { %v1004_v55 = vmul.f32 0.01, %v954_v51  ;;  %2885 = vmatprep.mubr.f32.mxu0 %v1017_v54  ;;  %vm988_vm11 = vcmp.ge.f32.partialorder %v954_v51, 0.0 }
 0x442   : > { %v1003_v57 = vmul.f32 0.01, %v949_v53  ;;  %v2837_v58 = vpop.f32.mrb[28].mxu1  ;;  %2886 = vmatmul.mubr.f32.gmra.mrb[40].mxu0 %v1018_v56  ;;  %vm987_vm10 = vcmp.ge.f32.partialorder %v949_v53, 0.0 }
 0x443   : > { %v964_v60 = vadd.f32 %v2837_v58, %v4056_v59  ;;  %v958_v61 = vpop.f32.mrb[29].mxu1  ;;  %v1020_v1 = vsel %vm988_vm11, %v954_v51, %v1004_v55 }
 0x444   : > { %v959_v62 = vadd.f32 %v4056_v59, %v958_v61  ;;  %v1019_v63 = vsel %vm987_vm10, %v949_v53, %v1003_v57 }
 0x445   : > { %v1006_v0 = vmul.f32 0.01, %v964_v60  ;;  %2888 = vmatprep.mubr.f32.mxu0 %v1019_v63  ;;  %vm990_vm13 = vcmp.ge.f32.partialorder %v964_v60, 0.0 }
 0x446   : > { %v1005_v41 = vmul.f32 0.01, %v959_v62  ;;  %v2840_v2 = vpop.f32.mrb[30].mxu1  ;;  %2889 = vmatmul.mubr.f32.gmra.mrb[42].mxu0 %v1020_v1  ;;  %vm989_vm12 = vcmp.ge.f32.partialorder %v959_v62, 0.0 }
 0x447   : > { %v974_v3 = vadd.f32 %v2840_v2, %v4056_v59  ;;  %v968_v4 = vpop.f32.mrb[31].mxu1  ;;  %v1022_v8 = vsel %vm990_vm13, %v964_v60, %v1006_v0 }
 0x448   : > { %v969_v5 = vadd.f32 %v4056_v59, %v968_v4  ;;  %v1021_v6 = vsel %vm989_vm12, %v959_v62, %v1005_v41  ;;  %v1389_v59 = vld [vmem:[#allocation6 + $0x1a8] sm:$0xff] }
 0x449   : > { %v1008_v7 = vmul.f32 0.01, %v974_v3  ;;  %2891 = vmatprep.mubr.f32.mxu0 %v1021_v6  ;;  %vm992_vm15 = vcmp.ge.f32.partialorder %v974_v3, 0.0  ;;  %v3370_v34 = vpack.c.bf16 %v1389_v59, %v1388_v18 }
 0x44a   : > { %v1007_v9 = vmul.f32 0.01, %v969_v5  ;;  %2892 = vmatmul.mubr.f32.gmra.mrb[44].mxu0 %v1022_v8  ;;  %vm991_vm14 = vcmp.ge.f32.partialorder %v969_v5, 0.0 }
 0x44b   : > { %v1024_v11 = vsel %vm992_vm15, %v974_v3, %v1008_v7  ;;  %3371 = vmatprep.subr.bf16.mxu0 %v3370_v34 }
 0x44c   : > { %v1023_v10 = vsel %vm991_vm14, %v969_v5, %v1007_v9  ;;  %3373 = vmatpush3.bf16.msra.mxu0 %v3370_v34 }
 0x44d   : > { %2894 = vmatprep.mubr.f32.mxu0 %v1023_v10  ;;  %3375 = vmatprep.subr.bf16.mxu0 %v3374_v37 }
 0x44e   : > { %2895 = vmatmul.mubr.f32.gmra.mrb[46].mxu0 %v1024_v11 }
 0x450   : > { %3377 = vmatpush3.bf16.msra.mxu0 %v3374_v37 }
 0x451   : > { %3379 = vmatprep.subr.bf16.mxu0 %v3378_v42 }
 0x454   : > { %3381 = vmatpush3.bf16.msra.mxu0 %v3378_v42 }
 0x455   : > { %3383 = vmatprep.subr.bf16.mxu0 %v3382_v45 }
 0x458   : > { %3385 = vmatpush3.bf16.msra.mxu0 %v3382_v45 }
 0x505   : > { %v2875_v46 = vpop.f32.mrb[32].mxu0 }
 0x506   : > { %v1107_v47 = vpop.f32.mrb[33].mxu0 }
 0x507   : > { %v3330_v48 = vpack.c.bf16 %v2875_v46, %v1107_v47 }
 0x509   : > { %v2878_v49 = vpop.f32.mrb[34].mxu0  ;;  %3331 = vmatprep.subr.bf16.mxu1 %v3330_v48 }
 0x50a   : > { %v1117_v50 = vpop.f32.mrb[35].mxu0  ;;  %3333 = vmatpush3.bf16.msra.mxu1 %v3330_v48 }
 0x50b   : > { %v3334_v51 = vpack.c.bf16 %v2878_v49, %v1117_v50 }
 0x50d   : > { %v2881_v52 = vpop.f32.mrb[36].mxu0  ;;  %3335 = vmatprep.subr.bf16.mxu1 %v3334_v51 }
 0x50e   : > { %v1127_v53 = vpop.f32.mrb[37].mxu0  ;;  %3337 = vmatpush3.bf16.msra.mxu1 %v3334_v51 }
 0x50f   : > { %v3338_v54 = vpack.c.bf16 %v2881_v52, %v1127_v53 }
 0x511   : > { %v2884_v55 = vpop.f32.mrb[38].mxu0  ;;  %3339 = vmatprep.subr.bf16.mxu1 %v3338_v54 }
 0x512   : > { %v1137_v56 = vpop.f32.mrb[39].mxu0  ;;  %3341 = vmatpush3.bf16.msra.mxu1 %v3338_v54 }
 0x513   : > { %v3342_v57 = vpack.c.bf16 %v2884_v55, %v1137_v56 }
 0x515   : > { %v2887_v58 = vpop.f32.mrb[40].mxu0  ;;  %3343 = vmatprep.subr.bf16.mxu1 %v3342_v57 }
 0x516   : > { %v1147_v60 = vpop.f32.mrb[41].mxu0  ;;  %3345 = vmatpush3.bf16.msra.mxu1 %v3342_v57 }
 0x517   : > { %v3346_v61 = vpack.c.bf16 %v2887_v58, %v1147_v60 }
 0x519   : > { %v2890_v62 = vpop.f32.mrb[42].mxu0  ;;  %3347 = vmatprep.subr.bf16.mxu1 %v3346_v61 }
 0x51a   : > { %v1157_v63 = vpop.f32.mrb[43].mxu0  ;;  %3349 = vmatpush3.bf16.msra.mxu1 %v3346_v61 }
 0x51b   : > { %v3350_v0 = vpack.c.bf16 %v2890_v62, %v1157_v63 }
 0x51d   : > { %v2893_v1 = vpop.f32.mrb[44].mxu0  ;;  %3351 = vmatprep.subr.bf16.mxu1 %v3350_v0 }
 0x51e   : > { %v1167_v41 = vpop.f32.mrb[45].mxu0  ;;  %3353 = vmatpush3.bf16.msra.mxu1 %v3350_v0 }
 0x51f   : > { %v3354_v2 = vpack.c.bf16 %v2893_v1, %v1167_v41 }
 0x521   : > { %v2896_v3 = vpop.f32.mrb[46].mxu0  ;;  %3355 = vmatprep.subr.bf16.mxu1 %v3354_v2 }
 0x522   : > { %v1177_v4 = vpop.f32.mrb[47].mxu0  ;;  %3357 = vmatpush3.bf16.msra.mxu1 %v3354_v2 }
 0x523   : > { %v3358_v5 = vpack.c.bf16 %v2896_v3, %v1177_v4 }
 0x525   : > { %3359 = vmatprep.subr.bf16.mxu1 %v3358_v5 }
 0x526   : > { %3361 = vmatpush3.bf16.msra.mxu1 %v3358_v5 }
 0x529   : > { %2930 = vmatmul.mubr.f32.vlgmr.msra.gmra.mrb[32].mxu1 %v3956_v19  ;;  %v1396_v19 = vld [vmem:[#allocation6 + $0x1e0] sm:$0xff] }
 0x52a   : > { %2932 = vmatprep.mubr.f32.mxu1 %v3959_v20  ;;  %v1397_v20 = vld [vmem:[#allocation6 + $0x1e8] sm:$0xff] }
 0x52d   : > { %2933 = vmatmul.mubr.f32.gmra.mrb[34].mxu1 %v3964_v21  ;;  %v3386_v21 = vpack.c.bf16 %v1397_v20, %v1396_v19 }
 0x52e   : > { %2935 = vmatprep.mubr.f32.mxu1 %v3967_v22  ;;  %v1398_v22 = vld [vmem:[#allocation6 + $0x1f0] sm:$0xff] }
 0x52f   : > { %3387 = vmatprep.subr.bf16.mxu0 %v3386_v21 }
 0x530   : > { %3389 = vmatpush3.bf16.msra.mxu0 %v3386_v21 }
 0x531   : > { %2936 = vmatmul.mubr.f32.gmra.mrb[36].mxu1 %v3972_v23  ;;  %v1399_v23 = vld [vmem:[#allocation6 + $0x1f8] sm:$0xff] }
 0x532   : > { %2938 = vmatprep.mubr.f32.mxu1 %v3975_v24  ;;  %v3390_v24 = vpack.c.bf16 %v1399_v23, %v1398_v22 }
 0x534   : > { %3391 = vmatprep.subr.bf16.mxu0 %v3390_v24 }
 0x535   : > { %2939 = vmatmul.mubr.f32.gmra.mrb[38].mxu1 %v3980_v25  ;;  %3393 = vmatpush3.bf16.msra.mxu0 %v3390_v24  ;;  %v4093_v25 = vld [vmem:[%s4218_s3 + $0x2] ss:$0 sm:$0xff] }
 0x536   : > { %2941 = vmatprep.mubr.f32.mxu1 %v3983_v26 }
 0x539   : > { %2942 = vmatmul.mubr.f32.gmra.mrb[40].mxu1 %v3988_v27 }
 0x53a   : > { %2944 = vmatprep.mubr.f32.mxu1 %v3991_v28 }
 0x53d   : > { %2945 = vmatmul.mubr.f32.gmra.mrb[42].mxu1 %v3996_v29 }
 0x53e   : > { %2947 = vmatprep.mubr.f32.mxu1 %v3999_v30 }
 0x541   : > { %2948 = vmatmul.mubr.f32.gmra.mrb[44].mxu1 %v4004_v31 }
 0x542   : > { %2950 = vmatprep.mubr.f32.mxu1 %v4007_v32 }
 0x545   : > { %2951 = vmatmul.mubr.f32.gmra.mrb[46].mxu1 %v4012_v33 }
 0x546   : > { %3041 = vmatprep.mubr.f32.mxu1 %v3952_v40 }
 0x5fc   : > { %v2931_v26 = vpop.f32.mrb[32].mxu1 }
 0x5fd   : > { %v1263_v27 = vadd.f32 %v2931_v26, %v4093_v25  ;;  %v1257_v28 = vpop.f32.mrb[33].mxu1 }
 0x5fe   : > { %v1258_v40 = vadd.f32 %v4093_v25, %v1257_v28 }
 0x5ff   : > { %v1353_v29 = vmul.f32 0.01, %v1263_v27  ;;  %vm1337_vm0 = vcmp.ge.f32.partialorder %v1263_v27, 0.0 }
 0x600   : > { %v1352_v30 = vmul.f32 0.01, %v1258_v40  ;;  %v2934_v31 = vpop.f32.mrb[34].mxu1  ;;  %vm1336_vm1 = vcmp.ge.f32.partialorder %v1258_v40, 0.0 }
 0x601   : > { %v1273_v32 = vadd.f32 %v2934_v31, %v4093_v25  ;;  %v1267_v33 = vpop.f32.mrb[35].mxu1  ;;  %v1369_v8 = vsel %vm1337_vm0, %v1263_v27, %v1353_v29 }
 0x602   : > { %v1268_v6 = vadd.f32 %v4093_v25, %v1267_v33  ;;  %v1368_v7 = vsel %vm1336_vm1, %v1258_v40, %v1352_v30 }
 0x603   : > { %v1355_v9 = vmul.f32 0.01, %v1273_v32  ;;  %2985 = vmatprep.mubr.f32.mxu0 %v1368_v7  ;;  %vm1339_vm3 = vcmp.ge.f32.partialorder %v1273_v32, 0.0 }
 0x604   : > { %v1354_v10 = vmul.f32 0.01, %v1268_v6  ;;  %v2937_v11 = vpop.f32.mrb[36].mxu1  ;;  %2986 = vmatmul.mubr.f32.vlgmr.msra.gmra.mrb[48].mxu0 %v1369_v8  ;;  %vm1338_vm2 = vcmp.ge.f32.partialorder %v1268_v6, 0.0 }
 0x605   : > { %v1283_v12 = vadd.f32 %v2937_v11, %v4093_v25  ;;  %v1277_v13 = vpop.f32.mrb[37].mxu1  ;;  %v1371_v17 = vsel %vm1339_vm3, %v1273_v32, %v1355_v9 }
 0x606   : > { %v1278_v14 = vadd.f32 %v4093_v25, %v1277_v13  ;;  %v1370_v15 = vsel %vm1338_vm2, %v1268_v6, %v1354_v10 }
 0x607   : > { %v1357_v16 = vmul.f32 0.01, %v1283_v12  ;;  %2988 = vmatprep.mubr.f32.mxu0 %v1370_v15  ;;  %vm1341_vm5 = vcmp.ge.f32.partialorder %v1283_v12, 0.0 }
 0x608   : > { %v1356_v18 = vmul.f32 0.01, %v1278_v14  ;;  %v2940_v59 = vpop.f32.mrb[38].mxu1  ;;  %2989 = vmatmul.mubr.f32.gmra.mrb[50].mxu0 %v1371_v17  ;;  %vm1340_vm4 = vcmp.ge.f32.partialorder %v1278_v14, 0.0 }
 0x609   : > { %v1293_v34 = vadd.f32 %v2940_v59, %v4093_v25  ;;  %v1287_v35 = vpop.f32.mrb[39].mxu1  ;;  %v1373_v39 = vsel %vm1341_vm5, %v1283_v12, %v1357_v16 }
 0x60a   : > { %v1288_v36 = vadd.f32 %v4093_v25, %v1287_v35  ;;  %v1372_v37 = vsel %vm1340_vm4, %v1278_v14, %v1356_v18  ;;  %v3579_v35 = vld [vmem:[%s3925_s10 + $0x8] sm:$0xff] }
 0x60b   : > { %v1359_v38 = vmul.f32 0.01, %v1293_v34  ;;  %2991 = vmatprep.mubr.f32.mxu0 %v1372_v37  ;;  %vm1343_vm7 = vcmp.ge.f32.partialorder %v1293_v34, 0.0  ;;  %v3581_v37 = vld [vmem:[%s3925_s10 + $0x18] sm:$0xff] }
 0x60c   : > { %v1358_v42 = vmul.f32 0.01, %v1288_v36  ;;  %v2943_v43 = vpop.f32.mrb[40].mxu1  ;;  %2992 = vmatmul.mubr.f32.gmra.mrb[52].mxu0 %v1373_v39  ;;  %vm1342_vm6 = vcmp.ge.f32.partialorder %v1288_v36, 0.0  ;;  %v3583_v39 = vld [vmem:[%s3925_s10 + $0x28] sm:$0xff] }
 0x60d   : > { %v1303_v44 = vadd.f32 %v2943_v43, %v4093_v25  ;;  %v1297_v45 = vpop.f32.mrb[41].mxu1  ;;  %v1375_v49 = vsel %vm1343_vm7, %v1293_v34, %v1359_v38  ;;  %v3582_v38 = vld [vmem:[%s3925_s10 + $0x20] sm:$0xff]  ;;  %v3585_v43 = vld [vmem:[%s3925_s10 + $0x38] sm:$0xff]  ;;  %vm1876_vm7 = vcmask 1041409  }
 0x60e   : > { %v1298_v46 = vadd.f32 %v4093_v25, %v1297_v45  ;;  %v1374_v47 = vsel %vm1342_vm6, %v1288_v36, %v1358_v42  ;;  %v3580_v36 = vld [vmem:[%s3925_s10 + $0x10] sm:$0xff]  ;;  %v3587_v45 = vld [vmem:[%s3925_s10 + $0x48] sm:$0xff] }
 0x60f   : > { %v1361_v48 = vmul.f32 0.01, %v1303_v44  ;;  %2994 = vmatprep.mubr.f32.mxu0 %v1374_v47  ;;  %vm1345_vm9 = vcmp.ge.f32.partialorder %v1303_v44, 0.0  ;;  %v3584_v42 = vld [vmem:[%s3925_s10 + $0x30] sm:$0xff]  ;;  %v3589_v47 = vld [vmem:[%s3925_s10 + $0x58] sm:$0xff] }
 0x610   : > { %v1360_v50 = vmul.f32 0.01, %v1298_v46  ;;  %v2946_v51 = vpop.f32.mrb[42].mxu1  ;;  %2995 = vmatmul.mubr.f32.gmra.mrb[54].mxu0 %v1375_v49  ;;  %vm1344_vm8 = vcmp.ge.f32.partialorder %v1298_v46, 0.0  ;;  %v3591_v49 = vld [vmem:[%s3925_s10 + $0x68] sm:$0xff] }
 0x611   : > { %v1313_v52 = vadd.f32 %v2946_v51, %v4093_v25  ;;  %v1307_v53 = vpop.f32.mrb[43].mxu1  ;;  %v1377_v57 = vsel %vm1345_vm9, %v1303_v44, %v1361_v48  ;;  %v3586_v44 = vld [vmem:[%s3925_s10 + $0x40] sm:$0xff]  ;;  %v3593_v51 = vld [vmem:[%s3925_s10 + $0x78] sm:$0xff] }
 0x612   : > { %v1308_v54 = vadd.f32 %v4093_v25, %v1307_v53  ;;  %v1376_v55 = vsel %vm1344_vm8, %v1298_v46, %v1360_v50  ;;  %v3588_v46 = vld [vmem:[%s3925_s10 + $0x50] sm:$0xff]  ;;  %v3590_v48 = vld [vmem:[%s3925_s10 + $0x60] sm:$0xff]  ;;  %v1840_v53 = vld [vmem:[#allocation6 + $0x208] sm:$0xff] }
 0x613   : > { %v1363_v56 = vmul.f32 0.01, %v1313_v52  ;;  %2997 = vmatprep.mubr.f32.mxu0 %v1376_v55  ;;  %vm1347_vm11 = vcmp.ge.f32.partialorder %v1313_v52, 0.0  ;;  %v3592_v50 = vld [vmem:[%s3925_s10 + $0x70] sm:$0xff] }
 0x614   : > { %v1362_v58 = vmul.f32 0.01, %v1308_v54  ;;  %v2949_v60 = vpop.f32.mrb[44].mxu1  ;;  %2998 = vmatmul.mubr.f32.gmra.mrb[56].mxu0 %v1377_v57  ;;  %vm1346_vm10 = vcmp.ge.f32.partialorder %v1308_v54, 0.0  ;;  %v1841_v55 = vld [vmem:[#allocation6 + $0x210] sm:$0xff] }
 0x615   : > { %v1323_v61 = vadd.f32 %v2949_v60, %v4093_v25  ;;  %v1317_v62 = vpop.f32.mrb[45].mxu1  ;;  %v1379_v41 = vsel %vm1347_vm11, %v1313_v52, %v1363_v56  ;;  %v1839_v52 = vld [vmem:[#allocation6 + $0x200] sm:$0xff]  ;;  %v1842_v56 = vld [vmem:[#allocation6 + $0x218] sm:$0xff]  ;;  %v1844_v60 = vld [vmem:[#allocation6 + $0x228] sm:$0xff] }
 0x616   : > { %v1318_v63 = vadd.f32 %v4093_v25, %v1317_v62  ;;  %v1378_v0 = vsel %vm1346_vm10, %v1308_v54, %v1362_v58  ;;  %v3426_v54 = vpack.c.bf16 %v1840_v53, %v1839_v52  ;;  %v3430_v57 = vpack.c.bf16 %v1842_v56, %v1841_v55  ;;  %v1843_v58 = vld [vmem:[#allocation6 + $0x220] sm:$0xff]  ;;  %v1845_v62 = vld [vmem:[#allocation6 + $0x230] sm:$0xff] }
 0x617   : > { %v1365_v1 = vmul.f32 0.01, %v1323_v61  ;;  %3000 = vmatprep.mubr.f32.mxu0 %v1378_v0  ;;  %vm1349_vm13 = vcmp.ge.f32.partialorder %v1323_v61, 0.0 }
 0x618   : > { %v1364_v2 = vmul.f32 0.01, %v1318_v63  ;;  %v2952_v3 = vpop.f32.mrb[46].mxu1  ;;  %3001 = vmatmul.mubr.f32.gmra.mrb[58].mxu0 %v1379_v41  ;;  %vm1348_vm12 = vcmp.ge.f32.partialorder %v1318_v63, 0.0  ;;  %3427 = vmatprep.subr.bf16.mxu0 %v3426_v54  ;;  %v1848_v41 = vld [vmem:[#allocation6 + $0x248] sm:$0xff] }
 0x619   : > { %v1333_v4 = vadd.f32 %v2952_v3, %v4093_v25  ;;  %v1327_v5 = vpop.f32.mrb[47].mxu1  ;;  %v1381_v22 = vsel %vm1349_vm13, %v1323_v61, %v1365_v1  ;;  %3429 = vmatpush3.bf16.msra.mxu0 %v3426_v54  ;;  %v3434_v61 = vpack.c.bf16 %v1844_v60, %v1843_v58  ;;  %v1847_v1 = vld [vmem:[#allocation6 + $0x240] sm:$0xff]  ;;  %v1849_v3 = vld [vmem:[#allocation6 + $0x250] sm:$0xff] }
 0x61a   : > { %v1328_v19 = vadd.f32 %v4093_v25, %v1327_v5  ;;  %v1380_v20 = vsel %vm1348_vm12, %v1318_v63, %v1364_v2  ;;  %3431 = vmatprep.subr.bf16.mxu0 %v3430_v57  ;;  %v1846_v63 = vld [vmem:[#allocation6 + $0x238] sm:$0xff]  ;;  %v3442_v2 = vpack.c.bf16 %v1848_v41, %v1847_v1  ;;  %v1851_v5 = vld [vmem:[#allocation6 + $0x260] sm:$0xff] }
 0x61b   : > { %v1367_v21 = vmul.f32 0.01, %v1333_v4  ;;  %3003 = vmatprep.mubr.f32.mxu0 %v1380_v20  ;;  %vm1351_vm15 = vcmp.ge.f32.partialorder %v1333_v4, 0.0  ;;  %v3438_v0 = vpack.c.bf16 %v1846_v63, %v1845_v62  ;;  %v1852_v20 = vld [vmem:[#allocation6 + $0x268] sm:$0xff] }
 0x61c   : > { %v1366_v23 = vmul.f32 0.01, %v1328_v19  ;;  %3004 = vmatmul.mubr.f32.gmra.mrb[60].mxu0 %v1381_v22  ;;  %vm1350_vm14 = vcmp.ge.f32.partialorder %v1328_v19, 0.0  ;;  %v1853_v22 = vld [vmem:[#allocation6 + $0x270] sm:$0xff] }
 0x61d   : > { %v1383_v26 = vsel %vm1351_vm15, %v1333_v4, %v1367_v21  ;;  %3433 = vmatpush3.bf16.msra.mxu0 %v3430_v57  ;;  %v1850_v4 = vld [vmem:[#allocation6 + $0x258] sm:$0xff]  ;;  %v3450_v21 = vpack.c.bf16 %v1852_v20, %v1851_v5 }
 0x61e   : > { %v1382_v24 = vsel %vm1350_vm14, %v1328_v19, %v1366_v23  ;;  %3435 = vmatprep.subr.bf16.mxu0 %v3434_v61  ;;  %v3446_v19 = vpack.c.bf16 %v1850_v4, %v1849_v3  ;;  %v1854_v23 = vld [vmem:[#allocation6 + $0x278] sm:$0xff]  ;;  %vm1878_vm14 = vcmask 1042434  }
 0x61f   : > { %3006 = vmatprep.mubr.f32.mxu0 %v1382_v24  ;;  %v1980_v24 = vld [vmem:[#allocation6 + $0x280] sm:$0xff] }
 0x620   : > { %3007 = vmatmul.mubr.f32.gmra.mrb[62].mxu0 %v1383_v26  ;;  %v1981_v26 = vld [vmem:[#allocation6 + $0x288] sm:$0xff] }
 0x621   : > { %3437 = vmatpush3.bf16.msra.mxu0 %v3434_v61 }
 0x622   : > { %3439 = vmatprep.subr.bf16.mxu0 %v3438_v0 }
 0x625   : > { %3441 = vmatpush3.bf16.msra.mxu0 %v3438_v0 }
 0x626   : > { %3443 = vmatprep.subr.bf16.mxu0 %v3442_v2 }
 0x629   : > { %3445 = vmatpush3.bf16.msra.mxu0 %v3442_v2 }
 0x62a   : > { %3447 = vmatprep.subr.bf16.mxu0 %v3446_v19 }
 0x62d   : > { %3449 = vmatpush3.bf16.msra.mxu0 %v3446_v19 }
 0x62e   : > { %3451 = vmatprep.subr.bf16.mxu0 %v3450_v21 }
 0x631   : > { %3453 = vmatpush3.bf16.msra.mxu0 %v3450_v21 }
 0x6d7   : > { %v2987_v27 = vpop.f32.mrb[48].mxu0 }
 0x6d8   : > { %v1466_v28 = vpop.f32.mrb[49].mxu0 }
 0x6d9   : > { %v3394_v40 = vpack.c.bf16 %v2987_v27, %v1466_v28  ;;  %v1982_v27 = vld [vmem:[#allocation6 + $0x290] sm:$0xff]  ;;  %v3454_v28 = vpack.c.bf16 %v1854_v23, %v1853_v22 }
 0x6db   : > { %v2990_v29 = vpop.f32.mrb[50].mxu0  ;;  %3395 = vmatprep.subr.bf16.mxu1 %v3394_v40  ;;  %3455 = vmatprep.subr.bf16.mxu0 %v3454_v28 }
 0x6dc   : > { %v1476_v30 = vpop.f32.mrb[51].mxu0  ;;  %3397 = vmatpush3.bf16.msra.mxu1 %v3394_v40  ;;  %v3458_v40 = vpack.c.bf16 %v1981_v26, %v1980_v24  ;;  %3457 = vmatpush3.bf16.msra.mxu0 %v3454_v28 }
 0x6dd   : > { %v3398_v25 = vpack.c.bf16 %v2990_v29, %v1476_v30  ;;  %v1983_v29 = vld [vmem:[#allocation6 + $0x298] sm:$0xff] }
 0x6de   : > { %v3462_v30 = vpack.c.bf16 %v1983_v29, %v1982_v27 }
 0x6df   : > { %v2993_v31 = vpop.f32.mrb[52].mxu0  ;;  %3399 = vmatprep.subr.bf16.mxu1 %v3398_v25 }
 0x6e0   : > { %v1486_v32 = vpop.f32.mrb[53].mxu0  ;;  %3401 = vmatpush3.bf16.msra.mxu1 %v3398_v25  ;;  %v1984_v25 = vld [vmem:[#allocation6 + $0x2a0] sm:$0xff] }
 0x6e1   : > { %v3402_v33 = vpack.c.bf16 %v2993_v31, %v1486_v32  ;;  %v1985_v31 = vld [vmem:[#allocation6 + $0x2a8] sm:$0xff] }
 0x6e2   : > { %v3466_v32 = vpack.c.bf16 %v1985_v31, %v1984_v25 }
 0x6e3   : > { %v2996_v6 = vpop.f32.mrb[54].mxu0  ;;  %3403 = vmatprep.subr.bf16.mxu1 %v3402_v33 }
 0x6e4   : > { %v1496_v7 = vpop.f32.mrb[55].mxu0  ;;  %3405 = vmatpush3.bf16.msra.mxu1 %v3402_v33  ;;  %v1986_v33 = vld [vmem:[#allocation6 + $0x2b0] sm:$0xff] }
 0x6e5   : > { %v3406_v8 = vpack.c.bf16 %v2996_v6, %v1496_v7  ;;  %v1987_v6 = vld [vmem:[#allocation6 + $0x2b8] sm:$0xff] }
 0x6e6   : > { %v3470_v7 = vpack.c.bf16 %v1987_v6, %v1986_v33 }
 0x6e7   : > { %v2999_v9 = vpop.f32.mrb[56].mxu0  ;;  %3407 = vmatprep.subr.bf16.mxu1 %v3406_v8 }
 0x6e8   : > { %v1506_v10 = vpop.f32.mrb[57].mxu0  ;;  %3409 = vmatpush3.bf16.msra.mxu1 %v3406_v8  ;;  %v1988_v8 = vld [vmem:[#allocation6 + $0x2c0] sm:$0xff] }
 0x6e9   : > { %v3410_v11 = vpack.c.bf16 %v2999_v9, %v1506_v10  ;;  %v1989_v9 = vld [vmem:[#allocation6 + $0x2c8] sm:$0xff] }
 0x6ea   : > { %v3474_v10 = vpack.c.bf16 %v1989_v9, %v1988_v8 }
 0x6eb   : > { %v3002_v12 = vpop.f32.mrb[58].mxu0  ;;  %3411 = vmatprep.subr.bf16.mxu1 %v3410_v11 }
 0x6ec   : > { %v1516_v13 = vpop.f32.mrb[59].mxu0  ;;  %3413 = vmatpush3.bf16.msra.mxu1 %v3410_v11  ;;  %v1990_v11 = vld [vmem:[#allocation6 + $0x2d0] sm:$0xff] }
 0x6ed   : > { %v3414_v14 = vpack.c.bf16 %v3002_v12, %v1516_v13  ;;  %v1991_v12 = vld [vmem:[#allocation6 + $0x2d8] sm:$0xff] }
 0x6ee   : > { %v3478_v13 = vpack.c.bf16 %v1991_v12, %v1990_v11 }
 0x6ef   : > { %v3005_v15 = vpop.f32.mrb[60].mxu0  ;;  %3415 = vmatprep.subr.bf16.mxu1 %v3414_v14 }
 0x6f0   : > { %v1526_v16 = vpop.f32.mrb[61].mxu0  ;;  %3417 = vmatpush3.bf16.msra.mxu1 %v3414_v14  ;;  %v4129_v14 = vld [vmem:[%s4218_s3 + $0x3] ss:$0 sm:$0xff] }
 0x6f1   : > { %v3418_v17 = vpack.c.bf16 %v3005_v15, %v1526_v16 }
 0x6f3   : > { %v3008_v18 = vpop.f32.mrb[62].mxu0  ;;  %3419 = vmatprep.subr.bf16.mxu1 %v3418_v17 }
 0x6f4   : > { %v1536_v59 = vpop.f32.mrb[63].mxu0  ;;  %3421 = vmatpush3.bf16.msra.mxu1 %v3418_v17 }
 0x6f5   : > { %v3422_v34 = vpack.c.bf16 %v3008_v18, %v1536_v59 }
 0x6f7   : > { %3423 = vmatprep.subr.bf16.mxu1 %v3422_v34 }
 0x6f8   : > { %3425 = vmatpush3.bf16.msra.mxu1 %v3422_v34 }
 0x6f9   : > { %3459 = vmatprep.subr.bf16.mxu1 %v3458_v40 }
 0x6fb   : > { %3042 = vmatmul.mubr.f32.vlgmr.msra.gmra.mrb[48].mxu1 %v3579_v35 }
 0x6fc   : > { %3044 = vmatprep.mubr.f32.mxu1 %v3580_v36  ;;  %3461 = vmatpush3.bf16.msra.mxu1 %v3458_v40 }
 0x6fd   : > { %3463 = vmatprep.subr.bf16.mxu1 %v3462_v30 }
 0x6ff   : > { %3045 = vmatmul.mubr.f32.gmra.mrb[50].mxu1 %v3581_v37 }
 0x700   : > { %3047 = vmatprep.mubr.f32.mxu1 %v3582_v38  ;;  %3465 = vmatpush3.bf16.msra.mxu1 %v3462_v30 }
 0x701   : > { %3467 = vmatprep.subr.bf16.mxu1 %v3466_v32 }
 0x703   : > { %3048 = vmatmul.mubr.f32.gmra.mrb[52].mxu1 %v3583_v39 }
 0x704   : > { %3050 = vmatprep.mubr.f32.mxu1 %v3584_v42  ;;  %3469 = vmatpush3.bf16.msra.mxu1 %v3466_v32 }
 0x705   : > { %3471 = vmatprep.subr.bf16.mxu1 %v3470_v7 }
 0x707   : > { %3051 = vmatmul.mubr.f32.gmra.mrb[54].mxu1 %v3585_v43 }
 0x708   : > { %3053 = vmatprep.mubr.f32.mxu1 %v3586_v44  ;;  %3473 = vmatpush3.bf16.msra.mxu1 %v3470_v7 }
 0x709   : > { %3475 = vmatprep.subr.bf16.mxu1 %v3474_v10 }
 0x70b   : > { %3054 = vmatmul.mubr.f32.gmra.mrb[56].mxu1 %v3587_v45 }
 0x70c   : > { %3056 = vmatprep.mubr.f32.mxu1 %v3588_v46  ;;  %3477 = vmatpush3.bf16.msra.mxu1 %v3474_v10 }
 0x70d   : > { %3479 = vmatprep.subr.bf16.mxu1 %v3478_v13 }
 0x70f   : > { %3057 = vmatmul.mubr.f32.gmra.mrb[58].mxu1 %v3589_v47 }
 0x710   : > { %3059 = vmatprep.mubr.f32.mxu1 %v3590_v48  ;;  %3481 = vmatpush3.bf16.msra.mxu1 %v3478_v13 }
 0x713   : > { %3060 = vmatmul.mubr.f32.gmra.mrb[60].mxu1 %v3591_v49 }
 0x714   : > { %3062 = vmatprep.mubr.f32.mxu1 %v3592_v50 }
 0x717   : > { %3063 = vmatmul.mubr.f32.gmra.mrb[62].mxu1 %v3593_v51 }
 0x7ce   : > { %v3043_v15 = vpop.f32.mrb[48].mxu1 }
 0x7cf   : > { %v1622_v16 = vadd.f32 %v3043_v15, %v4129_v14  ;;  %v1616_v17 = vpop.f32.mrb[49].mxu1 }
 0x7d0   : > { %v1617_v18 = vadd.f32 %v4129_v14, %v1616_v17 }
 0x7d1   : > { %vm1696_vm0 = vcmp.ge.f32.partialorder %v1622_v16, 0.0  ;;  %v1712_v59 = vmul.f32 0.01, %v1622_v16 }
 0x7d2   : > { %vm1695_vm1 = vcmp.ge.f32.partialorder %v1617_v18, 0.0  ;;  %v1711_v34 = vmul.f32 0.01, %v1617_v18  ;;  %v3046_v35 = vpop.f32.mrb[50].mxu1 }
 0x7d3   : > { %v1728_v36 = vsel %vm1696_vm0, %v1622_v16, %v1712_v59  ;;  %v1632_v37 = vadd.f32 %v3046_v35, %v4129_v14  ;;  %v1626_v38 = vpop.f32.mrb[51].mxu1  ;;  %vm1880_vm0 = vcmask 1043459  }
 0x7d4   : > { %v1749_v39 = vrot.slane %v1728_v36, 4  ;;  %v1727_v42 = vsel %vm1695_vm1, %v1617_v18, %v1711_v34  ;;  %v1627_v43 = vadd.f32 %v4129_v14, %v1626_v38 }
 0x7d5   : > { %v1743_v44 = vrot.slane %v1727_v42, 4  ;;  %vm1698_vm2 = vcmp.ge.f32.partialorder %v1632_v37, 0.0  ;;  %v1714_v45 = vmul.f32 0.01, %v1632_v37 }
 0x7d6   : > { %v1750_v46 = vadd.f32 %v1749_v39, %v1728_v36  ;;  %vm1697_vm3 = vcmp.ge.f32.partialorder %v1627_v43, 0.0  ;;  %v1713_v47 = vmul.f32 0.01, %v1627_v43  ;;  %v3049_v48 = vpop.f32.mrb[52].mxu1 }
 0x7d7   : > { %v1744_v49 = vadd.f32 %v1743_v44, %v1727_v42  ;;  %v1730_v50 = vsel %vm1698_vm2, %v1632_v37, %v1714_v45  ;;  %v1642_v51 = vadd.f32 %v3049_v48, %v4129_v14  ;;  %v1636_v52 = vpop.f32.mrb[53].mxu1  ;;  %vm1882_vm2 = vcmask 1044484  }
 0x7d8   : > { %v1751_v53 = vrot.slane %v1750_v46, 2  ;;  %v1761_v54 = vrot.slane %v1730_v50, 4  ;;  %v1729_v55 = vsel %vm1697_vm3, %v1627_v43, %v1713_v47  ;;  %v1637_v56 = vadd.f32 %v4129_v14, %v1636_v52 }
 0x7d9   : > { %v1745_v57 = vrot.slane %v1744_v49, 2  ;;  %v1755_v58 = vrot.slane %v1729_v55, 4  ;;  %vm1700_vm4 = vcmp.ge.f32.partialorder %v1642_v51, 0.0  ;;  %v1716_v60 = vmul.f32 0.01, %v1642_v51 }
 0x7da   : > { %v1752_v61 = vadd.f32 %v1751_v53, %v1750_v46  ;;  %v1762_v62 = vadd.f32 %v1761_v54, %v1730_v50  ;;  %vm1699_vm5 = vcmp.ge.f32.partialorder %v1637_v56, 0.0  ;;  %v1715_v63 = vmul.f32 0.01, %v1637_v56  ;;  %v3052_v0 = vpop.f32.mrb[54].mxu1 }
 0x7db   : > { %v1746_v1 = vadd.f32 %v1745_v57, %v1744_v49  ;;  %v1756_v41 = vadd.f32 %v1755_v58, %v1729_v55  ;;  %v1732_v2 = vsel %vm1700_vm4, %v1642_v51, %v1716_v60  ;;  %v1652_v3 = vadd.f32 %v3052_v0, %v4129_v14  ;;  %v1646_v4 = vpop.f32.mrb[55].mxu1 }
 0x7dc   : > { %v1753_v5 = vrot.slane %v1752_v61, 1  ;;  %v1763_v19 = vrot.slane %v1762_v62, 2  ;;  %v1773_v20 = vrot.slane %v1732_v2, 4  ;;  %v1731_v21 = vsel %vm1699_vm5, %v1637_v56, %v1715_v63 }
 0x7dd   : > { %v1747_v22 = vrot.slane %v1746_v1, 1  ;;  %v1757_v23 = vrot.slane %v1756_v41, 2  ;;  %v1767_v24 = vrot.slane %v1731_v21, 4  ;;  %vm1702_vm6 = vcmp.ge.f32.partialorder %v1652_v3, 0.0 }
 0x7de   : > { %v1754_v26 = vadd.f32 %v1753_v5, %v1752_v61  ;;  %v1774_v27 = vadd.f32 %v1773_v20, %v1732_v2  ;;  %v1718_v28 = vmul.f32 0.01, %v1652_v3  ;;  %v3055_v40 = vpop.f32.mrb[56].mxu1  ;;  %v1647_v31 = vadd.f32 %v4129_v14, %v1646_v4 }
 0x7df   : > { %v1748_v29 = vadd.f32 %v1747_v22, %v1746_v1  ;;  %v1758_v30 = vadd.f32 %v1757_v23, %v1756_v41  ;;  %v1768_v25 = vadd.f32 %v1767_v24, %v1731_v21  ;;  %v1656_v32 = vpop.f32.mrb[57].mxu1  ;;  %v4139_v33 = vadd.f32 %v1763_v19, %v1762_v62 }
 0x7e0   : > { %v1775_v6 = vrot.slane %v1774_v27, 2  ;;  %v1734_v7 = vsel %vm1702_vm6, %v1652_v3, %v1718_v28  ;;  %v1662_v8 = vadd.f32 %v3055_v40, %v4129_v14  ;;  %vm1701_vm8 = vcmp.ge.f32.partialorder %v1647_v31, 0.0 }
 0x7e1   : > { %v4143_v9 = vsel %vm1876_vm7, %v1754_v26, %v1748_v29  ;;  %v1759_v10 = vrot.slane %v1758_v30, 1  ;;  %v1769_v11 = vrot.slane %v1768_v25, 2  ;;  %v1785_v12 = vrot.slane %v1734_v7, 4 }
 0x7e2   : > { %v4145_v13 = vadd.f32 %v1775_v6, %v1774_v27  ;;  %v1717_v15 = vmul.f32 0.01, %v1647_v31  ;;  %v3058_v16 = vpop.f32.mrb[58].mxu1  ;;  %vm1704_vm9 = vcmp.ge.f32.partialorder %v1662_v8, 0.0  ;;  %v1720_v35 = vmul.f32 0.01, %v1662_v8 }
 0x7e3   : > { %v4147_v17 = vadd.f32 %v1769_v11, %v1768_v25  ;;  %v1786_v18 = vadd.f32 %v1785_v12, %v1734_v7  ;;  %v1666_v59 = vpop.f32.mrb[59].mxu1  ;;  %v1657_v36 = vadd.f32 %v4129_v14, %v1656_v32  ;;  %v1765_v37 = vrot.slane %v4139_v33, 1 }
 0x7e4   : > { %v1733_v34 = vsel %vm1701_vm8, %v1647_v31, %v1717_v15  ;;  %v4151_v38 = vadd.f32 %v1759_v10, %v1758_v30  ;;  %v1672_v42 = vadd.f32 %v3058_v16, %v4129_v14  ;;  %v1777_v43 = vrot.slane %v4145_v13, 1 }
 0x7e5   : > { %v1779_v39 = vrot.slane %v1733_v34, 4  ;;  %v1736_v44 = vsel %vm1704_vm9, %v1662_v8, %v1720_v35  ;;  %vm1703_vm10 = vcmp.ge.f32.partialorder %v1657_v36, 0.0  ;;  %v1719_v45 = vmul.f32 0.01, %v1657_v36 }
 0x7e6   : > { %v3061_v46 = vpop.f32.mrb[60].mxu1  ;;  %v1771_v47 = vrot.slane %v4147_v17, 1  ;;  %v1787_v48 = vrot.slane %v1786_v18, 2  ;;  %v1797_v50 = vrot.slane %v1736_v44, 4  ;;  %vm1706_vm11 = vcmp.ge.f32.partialorder %v1672_v42, 0.0 }
 0x7e7   : > { %v1780_v49 = vadd.f32 %v1779_v39, %v1733_v34  ;;  %v1676_v51 = vpop.f32.mrb[61].mxu1  ;;  %v1735_v52 = vsel %vm1703_vm10, %v1657_v36, %v1719_v45  ;;  %v1722_v53 = vmul.f32 0.01, %v1672_v42  ;;  %v1667_v54 = vadd.f32 %v4129_v14, %v1666_v59 }
 0x7e8   : > { %v1798_v56 = vadd.f32 %v1797_v50, %v1736_v44  ;;  %v1791_v57 = vrot.slane %v1735_v52, 4  ;;  %v1682_v58 = vadd.f32 %v3061_v46, %v4129_v14  ;;  %v1677_v62 = vadd.f32 %v4129_v14, %v1676_v51 }
 0x7e9   : > { %v1781_v55 = vrot.slane %v1780_v49, 2  ;;  %v1738_v60 = vsel %vm1706_vm11, %v1672_v42, %v1722_v53  ;;  %vm1705_vm12 = vcmp.ge.f32.partialorder %v1667_v54, 0.0  ;;  %v1721_v61 = vmul.f32 0.01, %v1667_v54 }
 0x7ea   : > { %v3064_v63 = vpop.f32.mrb[62].mxu1  ;;  %v4159_v0 = vadd.f32 %v1787_v48, %v1786_v18  ;;  %v1799_v1 = vrot.slane %v1798_v56, 2  ;;  %v1792_v41 = vadd.f32 %v1791_v57, %v1735_v52  ;;  %v1809_v2 = vrot.slane %v1738_v60, 4 }
 0x7eb   : > { %v1686_v3 = vpop.f32.mrb[63].mxu1  ;;  %v1782_v4 = vadd.f32 %v1781_v55, %v1780_v49  ;;  %v1737_v5 = vsel %vm1705_vm12, %v1667_v54, %v1721_v61  ;;  %vm1708_vm13 = vcmp.ge.f32.partialorder %v1682_v58, 0.0  ;;  %v1724_v19 = vmul.f32 0.01, %v1682_v58 }
 0x7ec   : > { %v1800_v20 = vadd.f32 %v1799_v1, %v1798_v56  ;;  %v1793_v21 = vrot.slane %v1792_v41, 2  ;;  %v1810_v22 = vadd.f32 %v1809_v2, %v1738_v60  ;;  %vm1707_vm15 = vcmp.ge.f32.partialorder %v1677_v62, 0.0 }
 0x7ed   : > { %v1803_v23 = vrot.slane %v1737_v5, 4  ;;  %v1740_v24 = vsel %vm1708_vm13, %v1682_v58, %v1724_v19  ;;  %v1723_v26 = vmul.f32 0.01, %v1677_v62  ;;  %v1692_v27 = vadd.f32 %v3064_v63, %v4129_v14 }
 0x7ee   : > { %v1801_v28 = vrot.slane %v1800_v20, 1  ;;  %v1794_v40 = vadd.f32 %v1793_v21, %v1792_v41  ;;  %v1811_v29 = vrot.slane %v1810_v22, 2  ;;  %v1821_v30 = vrot.slane %v1740_v24, 4 }
 0x7ef   : > { %v1804_v25 = vadd.f32 %v1803_v23, %v1737_v5  ;;  %v1739_v31 = vsel %vm1707_vm15, %v1677_v62, %v1723_v26  ;;  %vm1710_vm1 = vcmp.ge.f32.partialorder %v1692_v27, 0.0  ;;  %v1726_v32 = vmul.f32 0.01, %v1692_v27 }
 0x7f0   : > { %v1802_v6 = vadd.f32 %v1801_v28, %v1800_v20  ;;  %v1795_v7 = vrot.slane %v1794_v40, 1  ;;  %v1812_v8 = vadd.f32 %v1811_v29, %v1810_v22  ;;  %v1822_v10 = vadd.f32 %v1821_v30, %v1740_v24  ;;  %v1992_v28 = vld [vmem:[#allocation6 + $0x2e0] sm:$0xff]  ;;  %v1994_v29 = vld [vmem:[#allocation6 + $0x2f0] sm:$0xff] }
 0x7f1   : > { %vm1884_vm3 = vcmask 1045509   ;;  %v1805_v11 = vrot.slane %v1804_v25, 2  ;;  %v1815_v12 = vrot.slane %v1739_v31, 4  ;;  %v1742_v15 = vsel %vm1710_vm1, %v1692_v27, %v1726_v32  ;;  %v2082_v32 = vld [vmem:[#allocation6 + $0x300] sm:$0xff] }
 0x7f2   : > { %v1687_v16 = vadd.f32 %v4129_v14, %v1686_v3  ;;  %vm1886_vm4 = vcmask 1046534   ;;  %v1783_v18 = vrot.slane %v1782_v4, 1  ;;  %v1796_v59 = vadd.f32 %v1795_v7, %v1794_v40  ;;  %v1993_v40 = vld [vmem:[#allocation6 + $0x2e8] sm:$0xff]  ;;  %v2084_v7 = vld [vmem:[#allocation6 + $0x310] sm:$0xff] }
 0x7f3   : > { %v1823_v34 = vrot.slane %v1822_v10, 2  ;;  %v1833_v35 = vrot.slane %v1742_v15, 4  ;;  %v1806_v36 = vadd.f32 %v1805_v11, %v1804_v25  ;;  %v1816_v39 = vadd.f32 %v1815_v12, %v1739_v31  ;;  %v1995_v25 = vld [vmem:[#allocation6 + $0x2f8] sm:$0xff]  ;;  %v2086_v12 = vld [vmem:[#allocation6 + $0x320] sm:$0xff] }
 0x7f4   : > { %vm1709_vm5 = vcmp.ge.f32.partialorder %v1687_v16, 0.0  ;;  %v1725_v42 = vmul.f32 0.01, %v1687_v16  ;;  %v1890_v44 = vsel %vm1876_vm7, %v1802_v6, %v1796_v59  ;;  %v1813_v45 = vrot.slane %v1812_v8, 1  ;;  %v2083_v6 = vld [vmem:[#allocation6 + $0x308] sm:$0xff]  ;;  %v2089_v59 = vld [vmem:[#allocation6 + $0x338] sm:$0xff] }
 0x7f5   : > { %v1824_v46 = vadd.f32 %v1823_v34, %v1822_v10  ;;  %v1834_v48 = vadd.f32 %v1833_v35, %v1742_v15  ;;  %v1766_v49 = vadd.f32 %v1765_v37, %v4139_v33  ;;  %v1807_v50 = vrot.slane %v1806_v36, 1  ;;  %v2085_v10 = vld [vmem:[#allocation6 + $0x318] sm:$0xff]  ;;  %v2087_v15 = vld [vmem:[#allocation6 + $0x328] sm:$0xff]  ;;  %v2090_v35 = vld [vmem:[#allocation6 + $0x340] sm:$0xff] }
 0x7f6   : > { %v1817_v14 = vrot.slane %v1816_v39, 2  ;;  %v1741_v51 = vsel %vm1709_vm5, %v1687_v16, %v1725_v42  ;;  %v1778_v52 = vadd.f32 %v1777_v43, %v4145_v13  ;;  %v1772_v53 = vadd.f32 %v1771_v47, %v4147_v17  ;;  %v2092_v42 = vld [vmem:[#allocation6 + $0x350] sm:$0xff] }
 0x7f7   : > { %v1835_v54 = vrot.slane %v1834_v48, 2  ;;  %v1827_v55 = vrot.slane %v1741_v51, 4  ;;  %v1808_v56 = vadd.f32 %v1807_v50, %v1806_v36  ;;  %v1789_v58 = vrot.slane %v4159_v0, 1  ;;  %v2091_v36 = vld [vmem:[#allocation6 + $0x348] sm:$0xff] }
 0x7f8   : > { %v1818_v57 = vadd.f32 %v1817_v14, %v1816_v39  ;;  %v1879_v33 = vsel %vm1878_vm14, %v4151_v38, %v4143_v9  ;;  %v1814_v37 = vadd.f32 %v1813_v45, %v1812_v8  ;;  %v1825_v60 = vrot.slane %v1824_v46, 1 }
 0x7f9   : > { %v1828_v61 = vadd.f32 %v1827_v55, %v1741_v51  ;;  %v1784_v62 = vadd.f32 %v1783_v18, %v1782_v4  ;;  %v1891_v13 = vsel %vm1878_vm14, %v1808_v56, %v1890_v44  ;;  %v1836_v63 = vadd.f32 %v1835_v54, %v1834_v48  ;;  %v2088_v18 = vld [vmem:[#allocation6 + $0x330] sm:$0xff]  ;;  %v2093_v44 = vld [vmem:[#allocation6 + $0x358] sm:$0xff]  ;;  %v2094_v55 = vld [vmem:[#allocation6 + $0x360] sm:$0xff] }
 0x7fa   : > { %v1819_v43 = vrot.slane %v1818_v57, 1  ;;  %v1881_v17 = vsel %vm1880_vm0, %v1766_v49, %v1879_v33  ;;  %vm1888_vm6 = vcmask 1047559   ;;  %v1892_v41 = vsel %vm1880_vm0, %v1814_v37, %v1891_v13  ;;  %v2095_v56 = vld [vmem:[#allocation6 + $0x368] sm:$0xff]  ;;  %v2097_v33 = vld [vmem:[#allocation6 + $0x378] sm:$0xff] }
 0x7fb   : > { %v1829_v47 = vrot.slane %v1828_v61, 2  ;;  %v1883_v1 = vsel %vm1882_vm2, %v1772_v53, %v1881_v17  ;;  %v1790_v3 = vadd.f32 %v1789_v58, %v4159_v0  ;;  %v1826_v38 = vadd.f32 %v1825_v60, %v1824_v46  ;;  %v2300_v46 = vld [vmem:[%s4218_s3 + $0x4] ss:$0 sm:$0xff]  ;;  %v2096_v58 = vld [vmem:[#allocation6 + $0x370] sm:$0xff]  ;;  %v2301_v60 = vld [vmem:[%s4218_s3 + $0x5] ss:$0 sm:$0xff] }
 0x7fc   : > { %v1820_v2 = vadd.f32 %v1819_v43, %v1818_v57  ;;  %v1885_v9 = vsel %vm1884_vm3, %v1778_v52, %v1883_v1  ;;  %v1837_v19 = vrot.slane %v1836_v63, 1  ;;  %v3482_v30 = vpack.c.bf16 %v1993_v40, %v1992_v28 }
 0x7fd   : > { %v1830_v5 = vadd.f32 %v1829_v47, %v1828_v61  ;;  %v1887_v4 = vsel %vm1886_vm4, %v1784_v62, %v1885_v9  ;;  %v3486_v31 = vpack.c.bf16 %v1995_v25, %v1994_v29  ;;  %v3490_v8 = vpack.c.bf16 %v2083_v6, %v2082_v32 }
 0x7fe   : > { %v1889_v20 = vsel %vm1888_vm6, %v1790_v3, %v1887_v4  ;;  %v1893_v21 = vsel %vm1882_vm2, %v1820_v2, %v1892_v41  ;;  %v1838_v26 = vadd.f32 %v1837_v19, %v1836_v63  ;;  %3483 = vmatprep.subr.bf16.mxu1 %v3482_v30  ;;  %v3494_v11 = vpack.c.bf16 %v2085_v10, %v2084_v7  ;;  %v2302_v41 = vld [vmem:[%s4218_s3 + $0x6] ss:$0 sm:$0xff] }
 0x7ff   : > { %v1831_v22 = vrot.slane %v1830_v5, 1  ;;  %3097 = vmatprep.mubr.f32.mxu0 %v1889_v20  ;;  %v1894_v23 = vsel %vm1884_vm3, %v1826_v38, %v1893_v21  ;;  %3485 = vmatpush3.bf16.msra.mxu1 %v3482_v30  ;;  %v3498_v16 = vpack.c.bf16 %v2087_v15, %v2086_v12  ;;  %v3502_v34 = vpack.c.bf16 %v2089_v59, %v2088_v18 }
 0x800   : > { %3487 = vmatprep.subr.bf16.mxu1 %v3486_v31  ;;  %3491 = vmatprep.subr.bf16.mxu0 %v3490_v8  ;;  %v3506_v39 = vpack.c.bf16 %v2091_v36, %v2090_v35  ;;  %v3510_v45 = vpack.c.bf16 %v2093_v44, %v2092_v42  ;;  %v3514_v57 = vpack.c.bf16 %v2095_v56, %v2094_v55 }
 0x801   : > { %v1832_v24 = vadd.f32 %v1831_v22, %v1830_v5  ;;  %v3518_v37 = vpack.c.bf16 %v2097_v33, %v2096_v58 }
 0x803   : > { %v1895_v27 = vsel %vm1886_vm4, %v1832_v24, %v1894_v23  ;;  %3489 = vmatpush3.bf16.msra.mxu1 %v3486_v31 }
 0x804   : > { %v1896_v0 = vsel %vm1888_vm6, %v1838_v26, %v1895_v27 }
 0x805   : > { %3098 = vmatmul.mubr.f32.vlgmr.msra.gmra.mrb[64].mxu0 %v1896_v0 }
 0x806   : > { %3493 = vmatpush3.bf16.msra.mxu0 %v3490_v8 }
 0x807   : > { %3495 = vmatprep.subr.bf16.mxu0 %v3494_v11 }
 0x80a   : > { %3497 = vmatpush3.bf16.msra.mxu0 %v3494_v11 }
 0x80b   : > { %3499 = vmatprep.subr.bf16.mxu0 %v3498_v16 }
 0x80e   : > { %3501 = vmatpush3.bf16.msra.mxu0 %v3498_v16 }
 0x80f   : > { %3503 = vmatprep.subr.bf16.mxu0 %v3502_v34 }
 0x812   : > { %3505 = vmatpush3.bf16.msra.mxu0 %v3502_v34 }
 0x813   : > { %3507 = vmatprep.subr.bf16.mxu0 %v3506_v39 }
 0x816   : > { %3509 = vmatpush3.bf16.msra.mxu0 %v3506_v39 }
 0x817   : > { %3511 = vmatprep.subr.bf16.mxu0 %v3510_v45 }
 0x81a   : > { %3513 = vmatpush3.bf16.msra.mxu0 %v3510_v45 }
 0x81b   : > { %3515 = vmatprep.subr.bf16.mxu0 %v3514_v57 }
 0x81e   : > { %3517 = vmatpush3.bf16.msra.mxu0 %v3514_v57 }
 0x81f   : > { %3519 = vmatprep.subr.bf16.mxu0 %v3518_v37 }
 0x822   : > { %3521 = vmatpush3.bf16.msra.mxu0 %v3518_v37 }
 0x8d8   : > { %v3099_v48 = vpop.f32.mrb[64].mxu0 }
 0x8d9   : > { %v1971_v49 = vadd.f32 %v3099_v48, %v2300_v46  ;;  %v1965_v50 = vpop.f32.mrb[65].mxu0 }
 0x8da   : > { %v1966_v14 = vadd.f32 %v2300_v46, %v1965_v50 }
 0x8db   : > { %v1977_v51 = vmul.f32 0.01, %v1971_v49  ;;  %vm1975_vm7 = vcmp.ge.f32.partialorder %v1971_v49, 0.0 }
 0x8dc   : > { %v1976_v52 = vmul.f32 0.01, %v1966_v14  ;;  %vm1974_vm8 = vcmp.ge.f32.partialorder %v1966_v14, 0.0 }
 0x8dd   : > { %v1979_v54 = vsel %vm1975_vm7, %v1971_v49, %v1977_v51 }
 0x8de   : > { %v1978_v53 = vsel %vm1974_vm8, %v1966_v14, %v1976_v52 }
 0x8df   : > { %3132 = vmatprep.mubr.f32.mxu1 %v1978_v53 }
 0x8e0   : > { %3133 = vmatmul.mubr.f32.vlgmr.msra.gmra.mrb[64].mxu1 %v1979_v54 }
 0x9b3   : > { %v3134_v61 = vpop.f32.mrb[64].mxu1 }
 0x9b4   : > { %v2073_v62 = vadd.f32 %v3134_v61, %v2301_v60  ;;  %v2067_v13 = vpop.f32.mrb[65].mxu1 }
 0x9b5   : > { %v2068_v43 = vadd.f32 %v2301_v60, %v2067_v13 }
 0x9b6   : > { %v2079_v63 = vmul.f32 0.01, %v2073_v62  ;;  %vm2077_vm9 = vcmp.ge.f32.partialorder %v2073_v62, 0.0 }
 0x9b7   : > { %v2078_v17 = vmul.f32 0.01, %v2068_v43  ;;  %vm2076_vm10 = vcmp.ge.f32.partialorder %v2068_v43, 0.0 }
 0x9b8   : > { %v2081_v1 = vsel %vm2077_vm9, %v2073_v62, %v2079_v63 }
 0x9b9   : > { %v2080_v47 = vsel %vm2076_vm10, %v2068_v43, %v2078_v17 }
 0x9ba   : > { %3167 = vmatprep.mubr.f32.mxu0 %v2080_v47 }
 0x9bb   : > { %3168 = vmatmul.mubr.f32.vlgmr.msra.gmra.mrb[66].mxu0 %v2081_v1 }
 0xa8e   : > { %v3169_v2 = vpop.f32.mrb[66].mxu0 }
 0xa8f   : > { %v2169_v3 = vpop.f32.mrb[67].mxu0  ;;  %v2175_v38 = vadd.f32 %v3169_v2, %v2302_v41 }
 0xa90   : > { %v2170_v9 = vadd.f32 %v2302_v41, %v2169_v3 }
 0xa91   : > { %2179 = vst [vmem:[%s273_s26 + $0x8] sm:$0xff] %v2175_v38 }
 0xa92   : > { %2178 = vst [vmem:[%s273_s26] sm:$0xff] %v2170_v9 }
 0xa93 PF: > { %p17_p9 = scmp.ge.s32.totalorder %s3800_s25, 4   ;;  %s4231_s15 = smov %s3716_s16 }
 0xa94   : > { %s4232_s16 = smov %s3720_s17  ;;  %s4233_s17 = smov %s3829_s14 }
 0xa95   : > { %s4234_s18 = smov %s3800_s25  ;;  %19 = sbr.rel (!%p17_p9) target bundleno = 5 (0x5), region = 93 }
 0xa9c   :  { %2202 = vsyncpa [#allocation3], 1 }
 0xa9d   :  { %2204 = vsyncpa [#allocation3 + $0x1], 1 }
 0xa9e   :  { %2205 = vsyncpa [#allocation5], 1 }
 0xa9f   :  { %2207 = vsyncpa [#allocation5 + $0x1], 1 }

</bundles_post_ra>
